<compile_context>
chip_gen: v7x
topology: tpu7x:2x2x1
jax: 0.10.0
libtpu: 0.0.40
codegen_flags: <defaults>
</compile_context>

<pallas_src>
import jax
import jax.numpy as jnp
from jax.experimental import pallas as pl
from jax.experimental.pallas import tpu as pltpu


# Cross-generation VMEM budget used when selecting tiles.  32 MiB is safe on
# every listed generation: v5e/v6e have 128 MiB physical (16/32 MiB scoped
# defaults, raised below via vmem_limit_bytes), v7x has 64 MiB physical.
_VMEM_TILE_BUDGET = 32 << 20


# ---------------------------------------------------------------------------
# Kernel
# ---------------------------------------------------------------------------

def _ffn_fused_kernel(x_ref, w1_ref, w3_ref, w2_ref, o_ref,
                      acc1_ref, acc3_ref, oacc_ref):
    """Fused SwiGLU MLP tile step.

    grid = (M//tm, H//tn, K//tk):
      i (parallel)  : rows of x / rows of the output
      j (arbitrary) : hidden (ffn) tiles -- reduction axis of the down proj
      k (arbitrary) : model-dim tiles    -- reduction axis of the gate matmuls
    acc1/acc3: per-(i,j) f32 accumulators of x@W1 / x@W3 over k.
    oacc     : per-i f32 accumulator of gated@W2 over j (resident across j,k).
    """
    j = pl.program_id(1)
    k = pl.program_id(2)
    nj = pl.num_programs(1)
    nk = pl.num_programs(2)

    @pl.when(jnp.logical_and(j == 0, k == 0))
    def _():
        oacc_ref[...] = jnp.zeros_like(oacc_ref)

    @pl.when(k == 0)
    def _():
        acc1_ref[...] = jnp.zeros_like(acc1_ref)
        acc3_ref[...] = jnp.zeros_like(acc3_ref)

    x = x_ref[...]  # bf16 tile, read from HBM once per k-step, drives both dots
    acc1_ref[...] += jnp.dot(x, w1_ref[...], preferred_element_type=jnp.float32)
    acc3_ref[...] += jnp.dot(x, w3_ref[...], preferred_element_type=jnp.float32)

    @pl.when(k == nk - 1)
    def _():
        h1 = acc1_ref[...]                               # f32
        h3 = acc3_ref[...]                               # f32
        gated = (h1 * jax.nn.sigmoid(h1)) * h3           # silu(h1)*h3, f32 (EUP exp)
        gated = gated.astype(w2_ref.dtype)               # bf16 feeds MXU full-rate
        oacc_ref[...] += jnp.dot(gated, w2_ref[...],
                                 preferred_element_type=jnp.float32)

    @pl.when(jnp.logical_and(j == nj - 1, k == nk - 1))
    def _():
        o_ref[...] = oacc_ref[...].astype(o_ref.dtype)   # lane-dense [tm, E] store


# ---------------------------------------------------------------------------
# Tile selection / VMEM budgeting
# ---------------------------------------------------------------------------

def _tile_size(total, target, granules=(256, 128, 8)):
    """Largest block <= target dividing `total`, preferring MXU/lane friendly
    granularities.  Never silently returns the full dimension when it exceeds
    the target (that was the old VMEM-blowup hazard); the full dim is only the
    last-resort fallback for pathological shapes with no such divisor."""
    if total <= target:
        return total
    for g in granules:
        d = (target // g) * g
        while d >= g:
            if total % d == 0:
                return d
            d -= g
    return total  # pathological shape (no lane/sublane-aligned divisor)


def _fused_vmem_bytes(tm, tn, tk, E, in_bytes=2):
    """Estimated VMEM footprint of the fused kernel (double-buffered I/O +
    f32 scratch accumulators)."""
    f32 = 4
    dbuf_in = 2 * (tm * tk + 2 * tk * tn + tn * E) * in_bytes   # x, w1, w3, w2
    dbuf_out = 2 * tm * E * in_bytes                            # bf16 output
    scratch = (2 * tm * tn + tm * E) * f32                      # acc1, acc3, oacc
    return dbuf_in + dbuf_out + scratch


def _select_tiles(M, H, K, E, budget=_VMEM_TILE_BUDGET):
    """Start from large tiles (amortize the ~0.35us/grid-step overhead and cut
    HBM weight re-streaming) and shrink until the footprint fits the budget."""
    candidates = ((512, 512, 512), (512, 256, 512), (256, 256, 512),
                  (256, 256, 256), (128, 256, 256), (128, 128, 256),
                  (128, 128, 128), (64, 128, 128), (8, 128, 128))
    tm = tn = tk = None
    fp = 0
    for tm_t, tn_t, tk_t in candidates:
        tm = _tile_size(M, tm_t, granules=(256, 128, 8))   # sublane dim: mult of 8 ok
        tn = _tile_size(H, tn_t, granules=(256, 128))      # lane dim: mult of 128
        tk = _tile_size(K, tk_t, granules=(256, 128))      # lane dim: mult of 128
        fp = _fused_vmem_bytes(tm, tn, tk, E)
        if fp <= budget:
            return tm, tn, tk, fp
    return tm, tn, tk, fp


# ---------------------------------------------------------------------------
# Wrapper
# ---------------------------------------------------------------------------

def swiglu_ffn(x2d, w1, w3, w2, *, out_dtype=None, vmem_budget=_VMEM_TILE_BUDGET):
    """w2( silu(x2d @ w1) * (x2d @ w3) ) fused in a single pallas_call."""
    M, K = x2d.shape
    K1, H = w1.shape
    K3, H3 = w3.shape
    H2, E = w2.shape
    assert K == K1 == K3 and H == H3 == H2
    out_dtype = out_dtype or x2d.dtype

    tm, tn, tk, footprint = _select_tiles(M, H, K, E, budget=vmem_budget)

    # Raise the scoped VMEM limit only as far as needed: v5e's scoped default
    # is 16 MiB; cap well below v7x's 64 MiB physical to keep pipeline headroom.
    vmem_limit = int(min(max(footprint + (4 << 20), 16 << 20), 48 << 20))

    itemsize = jnp.dtype(x2d.dtype).itemsize
    cost = pl.CostEstimate(
        flops=2 * M * H * (2 * K + E),                 # W1 + W3 + W2 matmuls
        transcendentals=M * H,                         # sigmoid exp per gate elem
        bytes_accessed=(M * K + 2 * K * H + H * E + M * E) * itemsize,
    )

    return pl.pallas_call(
        _ffn_fused_kernel,
        out_shape=jax.ShapeDtypeStruct((M, E), out_dtype),
        grid_spec=pltpu.PrefetchScalarGridSpec(
            num_scalar_prefetch=0,
            grid=(M // tm, H // tn, K // tk),
            in_specs=[
                pl.BlockSpec((tm, tk), lambda i, j, k: (i, k)),   # x
                pl.BlockSpec((tk, tn), lambda i, j, k: (k, j)),   # w1
                pl.BlockSpec((tk, tn), lambda i, j, k: (k, j)),   # w3
                pl.BlockSpec((tn, E), lambda i, j, k: (j, 0)),    # w2 (full E width)
            ],
            out_specs=pl.BlockSpec((tm, E), lambda i, j, k: (i, 0)),
            scratch_shapes=[
                pltpu.VMEM((tm, tn), jnp.float32),   # x@W1 accumulator
                pltpu.VMEM((tm, tn), jnp.float32),   # x@W3 accumulator
                pltpu.VMEM((tm, E), jnp.float32),    # down-projection accumulator
            ],
        ),
        compiler_params=pltpu.CompilerParams(
            # Only M stays parallel: j and k both feed resident accumulators
            # (gate accs over k, output acc over j).  Ensure M//tm >= 2 at
            # deployment shapes so both v7x TensorCores get work.
            dimension_semantics=("parallel", "arbitrary", "arbitrary"),
            vmem_limit_bytes=vmem_limit,
        ),
        cost_estimate=cost,
    )(x2d, w1, w3, w2)


# ---------------------------------------------------------------------------
# FeedForward forward (matches the torch module semantics)
# ---------------------------------------------------------------------------

def feed_forward(params, x):
    """x: [B, S, dim] bf16 -> [B, S, dim] bf16."""
    B, S, E = x.shape
    x2d = x.reshape(B * S, E)
    out = swiglu_ffn(x2d, params["w1"], params["w3"], params["w2"])
    # TODO(synk): all_reduce_sum (jax.lax.psum over 'tp') omitted — identity at
    # tp_size=1; checkpoint_name('mlpwi'/'mlpwo') are remat tags (no-op forward).
    return out.reshape(B, S, E)


def compute_hidden_dim(dim, hidden_dim, multiple_of, ffn_dim_multiplier):
    """Exactly the hidden-dim arithmetic from FeedForward.__init__."""
    hidden_dim = int(2 * hidden_dim / 3)
    if ffn_dim_multiplier is not None:
        hidden_dim = int(ffn_dim_multiplier * hidden_dim)
    hidden_dim = multiple_of * ((hidden_dim + multiple_of - 1) // multiple_of)
    return hidden_dim


# ---------------------------------------------------------------------------
# Main
# ---------------------------------------------------------------------------

if __name__ == "__main__":
    # Small llama-style config: dim=256, hidden_dim=4*dim, multiple_of=256,
    # ffn_dim_multiplier=None -> ffn hidden = 768.  B=2, S=128 so the hidden
    # grid axis has multiple steps (M=256, H=768, K=256).
    B, S = 2, 128
    dim = 256
    hidden = compute_hidden_dim(dim, 4 * dim, multiple_of=256, ffn_dim_multiplier=None)
    assert hidden == 768

    key = jax.random.PRNGKey(0)
    k1, k2, k3, kx = jax.random.split(key, 4)
    params = {
        # stored as (in, out) == torch weight.T, so y = x @ W
        "w1": (jax.random.normal(k1, (dim, hidden)) * 0.02).astype(jnp.bfloat16),
        "w3": (jax.random.normal(k3, (dim, hidden)) * 0.02).astype(jnp.bfloat16),
        "w2": (jax.random.normal(k2, (hidden, dim)) * 0.02).astype(jnp.bfloat16),
    }
    x = jax.random.normal(kx, (B, S, dim)).astype(jnp.bfloat16)

    out = feed_forward(params, x)
    out = jax.block_until_ready(out)
    assert out.shape == (B, S, dim) and out.dtype == jnp.bfloat16

    # Correctness check against a pure-JAX reference with the same dtype
    # policy (bf16 operands, f32 accumulation, bf16 gated intermediate).
    x2d = x.reshape(B * S, dim)
    h1 = jnp.dot(x2d, params["w1"], preferred_element_type=jnp.float32)
    h3 = jnp.dot(x2d, params["w3"], preferred_element_type=jnp.float32)
    gated_ref = ((h1 * jax.nn.sigmoid(h1)) * h3).astype(jnp.bfloat16)
    ref = jnp.dot(gated_ref, params["w2"], preferred_element_type=jnp.float32)
    ref = ref.astype(jnp.bfloat16).reshape(B, S, dim)
    assert jnp.allclose(
        out.astype(jnp.float32), ref.astype(jnp.float32), atol=2e-2, rtol=5e-2
    )

    print("KERNEL_OK")
</pallas_src>

<mosaic_0001>
module attributes {stable_mosaic.version = 11 : i64} {
  func.func @_ffn_fused_kernel(%arg0: i32, %arg1: i32, %arg2: i32, %arg3: memref<256x256xbf16, #tpu.memory_space<vmem>>, %arg4: memref<256x256xbf16, #tpu.memory_space<vmem>>, %arg5: memref<256x256xbf16, #tpu.memory_space<vmem>>, %arg6: memref<256x256xbf16, #tpu.memory_space<vmem>>, %arg7: memref<256x256xbf16, #tpu.memory_space<vmem>>, %arg8: memref<256x256xf32, #tpu.memory_space<vmem>>, %arg9: memref<256x256xf32, #tpu.memory_space<vmem>>, %arg10: memref<256x256xf32, #tpu.memory_space<vmem>>) attributes {dimension_semantics = [#tpu.dimension_semantics<parallel>, #tpu.dimension_semantics<arbitrary>, #tpu.dimension_semantics<arbitrary>], iteration_bounds = array<i64: 1, 3, 1>, scalar_prefetch = 0 : i64, scratch_operands = 3 : i64, tpu.core_type = #tpu.core_type<tc>, window_params = [{transform_indices = @transform_0, window_bounds = array<i64: 256, 256>}, {transform_indices = @transform_1, window_bounds = array<i64: 256, 256>}, {transform_indices = @transform_2, window_bounds = array<i64: 256, 256>}, {transform_indices = @transform_3, window_bounds = array<i64: 256, 256>}, {transform_indices = @transform_4, window_bounds = array<i64: 256, 256>}]} {
    %c0_i32 = arith.constant 0 : i32
    %0 = arith.cmpi eq, %arg1, %c0_i32 : i32
    %c0_i32_0 = arith.constant 0 : i32
    %1 = arith.cmpi eq, %arg2, %c0_i32_0 : i32
    %2 = arith.andi %0, %1 : i1
    %3 = arith.extui %2 : i1 to i32
    %c0_i32_1 = arith.constant 0 : i32
    %4 = arith.cmpi ne, %3, %c0_i32_1 : i32
    scf.if %4 {
      %cst_22 = arith.constant 0.000000e+00 : f32
      %27 = vector.broadcast %cst_22 : f32 to vector<256x256xf32>
      %c0_23 = arith.constant 0 : index
      %c0_24 = arith.constant 0 : index
      %28 = vector.load %arg10[%c0_23, %c0_24] : memref<256x256xf32, #tpu.memory_space<vmem>>, vector<256x256xf32>
      tpu.vector_store %arg10[%c0_23, %c0_24], %27 {strides = array<i32>} : memref<256x256xf32, #tpu.memory_space<vmem>>, vector<256x256xf32>,
    } else {
    }
    %c0_i32_2 = arith.constant 0 : i32
    %5 = arith.cmpi eq, %arg2, %c0_i32_2 : i32
    %6 = arith.extui %5 : i1 to i32
    %c0_i32_3 = arith.constant 0 : i32
    %7 = arith.cmpi ne, %6, %c0_i32_3 : i32
    scf.if %7 {
      %cst_22 = arith.constant 0.000000e+00 : f32
      %27 = vector.broadcast %cst_22 : f32 to vector<256x256xf32>
      %c0_23 = arith.constant 0 : index
      %c0_24 = arith.constant 0 : index
      %28 = vector.load %arg8[%c0_23, %c0_24] : memref<256x256xf32, #tpu.memory_space<vmem>>, vector<256x256xf32>
      tpu.vector_store %arg8[%c0_23, %c0_24], %27 {strides = array<i32>} : memref<256x256xf32, #tpu.memory_space<vmem>>, vector<256x256xf32>,
      %cst_25 = arith.constant 0.000000e+00 : f32
      %29 = vector.broadcast %cst_25 : f32 to vector<256x256xf32>
      %c0_26 = arith.constant 0 : index
      %c0_27 = arith.constant 0 : index
      %30 = vector.load %arg9[%c0_26, %c0_27] : memref<256x256xf32, #tpu.memory_space<vmem>>, vector<256x256xf32>
      tpu.vector_store %arg9[%c0_26, %c0_27], %29 {strides = array<i32>} : memref<256x256xf32, #tpu.memory_space<vmem>>, vector<256x256xf32>,
    } else {
    }
    %c0 = arith.constant 0 : index
    %c0_4 = arith.constant 0 : index
    %8 = vector.load %arg3[%c0, %c0_4] : memref<256x256xbf16, #tpu.memory_space<vmem>>, vector<256x256xbf16>
    %c0_5 = arith.constant 0 : index
    %c0_6 = arith.constant 0 : index
    %9 = vector.load %arg8[%c0_5, %c0_6] : memref<256x256xf32, #tpu.memory_space<vmem>>, vector<256x256xf32>
    %c0_7 = arith.constant 0 : index
    %c0_8 = arith.constant 0 : index
    %10 = vector.load %arg4[%c0_7, %c0_8] : memref<256x256xbf16, #tpu.memory_space<vmem>>, vector<256x256xbf16>
    %cst = arith.constant dense<0.000000e+00> : vector<256x256xf32>
    %11 = tpu.matmul %8, %10, %cst {dimension_numbers = #tpu.dot_dimension_numbers<[1], [0], [0], [1], [0, 0, 1, 1], [], []>} : vector<256x256xbf16>, vector<256x256xbf16>, vector<256x256xf32> -> vector<256x256xf32>
    %12 = arith.addf %9, %11 : vector<256x256xf32>
    %c0_9 = arith.constant 0 : index
    %c0_10 = arith.constant 0 : index
    %13 = vector.load %arg8[%c0_9, %c0_10] : memref<256x256xf32, #tpu.memory_space<vmem>>, vector<256x256xf32>
    tpu.vector_store %arg8[%c0_9, %c0_10], %12 {strides = array<i32>} : memref<256x256xf32, #tpu.memory_space<vmem>>, vector<256x256xf32>,
    %c0_11 = arith.constant 0 : index
    %c0_12 = arith.constant 0 : index
    %14 = vector.load %arg9[%c0_11, %c0_12] : memref<256x256xf32, #tpu.memory_space<vmem>>, vector<256x256xf32>
    %c0_13 = arith.constant 0 : index
    %c0_14 = arith.constant 0 : index
    %15 = vector.load %arg5[%c0_13, %c0_14] : memref<256x256xbf16, #tpu.memory_space<vmem>>, vector<256x256xbf16>
    %cst_15 = arith.constant dense<0.000000e+00> : vector<256x256xf32>
    %16 = tpu.matmul %8, %15, %cst_15 {dimension_numbers = #tpu.dot_dimension_numbers<[1], [0], [0], [1], [0, 0, 1, 1], [], []>} : vector<256x256xbf16>, vector<256x256xbf16>, vector<256x256xf32> -> vector<256x256xf32>
    %17 = arith.addf %14, %16 : vector<256x256xf32>
    %c0_16 = arith.constant 0 : index
    %c0_17 = arith.constant 0 : index
    %18 = vector.load %arg9[%c0_16, %c0_17] : memref<256x256xf32, #tpu.memory_space<vmem>>, vector<256x256xf32>
    tpu.vector_store %arg9[%c0_16, %c0_17], %17 {strides = array<i32>} : memref<256x256xf32, #tpu.memory_space<vmem>>, vector<256x256xf32>,
    %c0_i32_18 = arith.constant 0 : i32
    %19 = arith.cmpi eq, %arg2, %c0_i32_18 : i32
    %20 = arith.extui %19 : i1 to i32
    %c0_i32_19 = arith.constant 0 : i32
    %21 = arith.cmpi ne, %20, %c0_i32_19 : i32
    scf.if %21 {
      %c0_22 = arith.constant 0 : index
      %c0_23 = arith.constant 0 : index
      %27 = vector.load %arg8[%c0_22, %c0_23] : memref<256x256xf32, #tpu.memory_space<vmem>>, vector<256x256xf32>
      %c0_24 = arith.constant 0 : index
      %c0_25 = arith.constant 0 : index
      %28 = vector.load %arg9[%c0_24, %c0_25] : memref<256x256xf32, #tpu.memory_space<vmem>>, vector<256x256xf32>
      %29 = arith.negf %27 : vector<256x256xf32>
      %30 = math.exp %29 : vector<256x256xf32>
      %cst_26 = arith.constant 1.000000e+00 : f32
      %31 = vector.broadcast %cst_26 : f32 to vector<256x256xf32>
      %32 = arith.addf %31, %30 : vector<256x256xf32>
      %33 = arith.divf %31, %32 : vector<256x256xf32>
      %34 = arith.mulf %27, %33 : vector<256x256xf32>
      %35 = arith.mulf %34, %28 : vector<256x256xf32>
      %36 = arith.truncf %35 : vector<256x256xf32> to vector<256x256xbf16>
      %c0_27 = arith.constant 0 : index
      %c0_28 = arith.constant 0 : index
      %37 = vector.load %arg10[%c0_27, %c0_28] : memref<256x256xf32, #tpu.memory_space<vmem>>, vector<256x256xf32>
      %c0_29 = arith.constant 0 : index
      %c0_30 = arith.constant 0 : index
      %38 = vector.load %arg6[%c0_29, %c0_30] : memref<256x256xbf16, #tpu.memory_space<vmem>>, vector<256x256xbf16>
      %cst_31 = arith.constant dense<0.000000e+00> : vector<256x256xf32>
      %39 = tpu.matmul %36, %38, %cst_31 {dimension_numbers = #tpu.dot_dimension_numbers<[1], [0], [0], [1], [0, 0, 1, 1], [], []>} : vector<256x256xbf16>, vector<256x256xbf16>, vector<256x256xf32> -> vector<256x256xf32>
      %40 = arith.addf %37, %39 : vector<256x256xf32>
      %c0_32 = arith.constant 0 : index
      %c0_33 = arith.constant 0 : index
      %41 = vector.load %arg10[%c0_32, %c0_33] : memref<256x256xf32, #tpu.memory_space<vmem>>, vector<256x256xf32>
      tpu.vector_store %arg10[%c0_32, %c0_33], %40 {strides = array<i32>} : memref<256x256xf32, #tpu.memory_space<vmem>>, vector<256x256xf32>,
    } else {
    }
    %c2_i32 = arith.constant 2 : i32
    %22 = arith.cmpi eq, %arg1, %c2_i32 : i32
    %c0_i32_20 = arith.constant 0 : i32
    %23 = arith.cmpi eq, %arg2, %c0_i32_20 : i32
    %24 = arith.andi %22, %23 : i1
    %25 = arith.extui %24 : i1 to i32
    %c0_i32_21 = arith.constant 0 : i32
    %26 = arith.cmpi ne, %25, %c0_i32_21 : i32
    scf.if %26 {
      %c0_22 = arith.constant 0 : index
      %c0_23 = arith.constant 0 : index
      %27 = vector.load %arg10[%c0_22, %c0_23] : memref<256x256xf32, #tpu.memory_space<vmem>>, vector<256x256xf32>
      %28 = arith.truncf %27 : vector<256x256xf32> to vector<256x256xbf16>
      %c0_24 = arith.constant 0 : index
      %c0_25 = arith.constant 0 : index
      %29 = vector.load %arg7[%c0_24, %c0_25] : memref<256x256xbf16, #tpu.memory_space<vmem>>, vector<256x256xbf16>
      tpu.vector_store %arg7[%c0_24, %c0_25], %28 {strides = array<i32>} : memref<256x256xbf16, #tpu.memory_space<vmem>>, vector<256x256xbf16>,
    } else {
    }
    return
  }
  func.func @transform_0(%arg0: i32, %arg1: i32, %arg2: i32) -> (i32, i32) {
    %c0_i32 = arith.constant 0 : i32
    return %arg0, %arg2 : i32, i32
  }
  func.func @transform_1(%arg0: i32, %arg1: i32, %arg2: i32) -> (i32, i32) {
    %c0_i32 = arith.constant 0 : i32
    return %arg2, %arg1 : i32, i32
  }
  func.func @transform_2(%arg0: i32, %arg1: i32, %arg2: i32) -> (i32, i32) {
    %c0_i32 = arith.constant 0 : i32
    return %arg2, %arg1 : i32, i32
  }
  func.func @transform_3(%arg0: i32, %arg1: i32, %arg2: i32) -> (i32, i32) {
    %c0_i32 = arith.constant 0 : i32
    %c0_i32_0 = arith.constant 0 : i32
    return %arg1, %c0_i32 : i32, i32
  }
  func.func @transform_4(%arg0: i32, %arg1: i32, %arg2: i32) -> (i32, i32) {
    %c0_i32 = arith.constant 0 : i32
    %c0_i32_0 = arith.constant 0 : i32
    return %arg0, %c0_i32 : i32, i32
  }
}

</mosaic_0001>

<bundles_post_ra>
// kernel: tpu_custom_call.1
= control target key start
LH: loop header
LB: loop body
LE: loop exit
PB: predicated region body
PF: predicated region fallthrough
CT: control target
= control target key end

     0   :  { %s5685_s0 = inlined_call_operand.hbm [shape: bf16[256,256], index: 0, kind: input, shape index: {}]   ;;  %s5686_s1 = inlined_call_operand.hbm [shape: bf16[256,768], index: 1, kind: input, shape index: {}]   ;;  %s5687_s2 = inlined_call_operand.hbm [shape: bf16[256,768], index: 2, kind: input, shape index: {}]   ;;  %s5688_s3 = inlined_call_operand.hbm [shape: bf16[768,256], index: 3, kind: input, shape index: {}]   ;;  %s5689_s4 = inlined_call_operand.hbm [shape: bf16[256,256], index: 4, kind: output, shape index: {}]  }
   0x1   :  { %5729 = sst [smem:[#allocation46_spill]] %s5686_s1 }
   0x2   :  { %5730 = sst [smem:[#allocation47_spill]] %s5687_s2 }
   0x3   :  { %9 = vsyncpa [#allocation6], 0 }
   0x4   :  { %10 = vsyncpa [#allocation9], 0 }
   0x5   :  { %12 = vsyncpa [#allocation9 + $0x1], 0 }
   0x6   :  { %13 = vsyncpa [#allocation12], 0 }
   0x7   :  { %15 = vsyncpa [#allocation12 + $0x1], 0 }
   0x8   :  { %16 = vsyncpa [#allocation7], 0  ;;  %s4687_s15 = smov 0   ;;  %s4689_s16 = smov 0  }
   0x9   :  { %s4691_s17 = smov 0   ;;  %s4693_s18 = smov 0  }
   0xa   :  { %s4695_s19 = smov 0   ;;  %s4697_s20 = smov 0  }
   0xb LB: > { %s37_s21 = sadd.s32 1, %s4645_s19  ;;  %s78_s22 = sadd.s32 1, %s4637_s17  ;;  %s4649_s20 = sphi %s4697_s20, %s22_s20   ;;  %s4645_s19 = sphi %s4695_s19, %s5818_s19   ;;  %s4641_s18 = sphi %s4693_s18, %s5817_s18   ;;  %s4637_s17 = sphi %s4691_s17, %s5816_s17   ;;  %s4633_s16 = sphi %s4689_s16, %s5815_s16   ;;  %s4629_s15 = sphi %s4687_s15, %s5814_s15  }
   0xc   : > { %p39_p0 = scmp.ge.s32.totalorder %s37_s21, 3  ;;  %p85_p1 = scmp.ne.s32.totalorder %s4637_s17, %s4633_s16 }
   0xd   : > { %p86_p2 = scmp.eq.s32.totalorder %s4649_s20, 0  ;;  %p3935_p5 = scmp.lt.s32.totalorder %s4649_s20, 3 }
   0xe   : > { %s5820_s21 = smov (%p39_p0, %s37_s21), 0  ;;  %s214_s25 = sand.u32 1, %s4649_s20  }
   0xf   : > { %p4724_p3 = por %p86_p2, %p85_p1  ;;  %s74_s24 = ssub.s32 %s4645_s19, %s5820_s21 }
  0x10   : > { %p76_p4 = scmp.eq.s32.totalorder %s74_s24, 0  ;;  %s5690_s26 = sand.u32 1, %s4637_s17  }
  0x11   : > { %s4738_s28 = sshll.u32 %s5690_s26, 8  ;;  %s3836_s29 = sshll.u32 %s4645_s19, 7 }
  0x12   : > { %s4734_s27 = scalar_select %p76_p4, %s4637_s17, %s78_s22  }
  0x13   : > { %s5732_s1 = sld [smem:[#allocation46_spill]]  ;;  %s218_s7 = scalar_lea.vmem [#allocation8], %s4738_s28 }
  0x14   : > { %s228_s8 = sshll.u32 %s218_s7, 4  ;;  %p4751_p6 = pnand %p3935_p5, %p4724_p3  ;;  %s4747_s8 = int_to_ptr.vmem [resolvable:$true] %s228_s8 }
  0x15   : > { %s5734_s2 = sld [smem:[#allocation47_spill]]  ;;  %s4760_s13 = scalar_lea.sflag [#allocation9], %s214_s25 }
  0x16   : > { %s5733_s9 = scalar_select %p4751_p6, 1, 0 }
  0x17   : > { %p4766_p8 = pneg %p4751_p6 }
  0x19   : > { %s4744_s6 = scalar_lea.hbm %s5732_s1, %s3836_s29  ;;  %s4448_s30 = scalar_lea.hbm %s5732_s1, 12288 }
  0x1a   : > { %s4443_s14 = scalar_lea.hbm %s4744_s6, 4096  ;;  %p4449_p11 = scmp.lt.u32.totalorder %s4744_s6, %s5732_s1 }
  0x1b   : > { %s4758_s12 = scalar_lea.hbm %s5734_s2, %s3836_s29  ;;  %p4444_p7 = scmp.ne.s32.totalorder %s4744_s6, %s4443_s14 }
  0x1c   : > { %s5735_s22 = scalar_select %p4766_p8, 1, 0 }
  0x1d   : > { %p4446_p9 = pnand %p4766_p8, %p4444_p7  ;;  %p4450_p12 = scmp.lt.u32.totalorder %s4448_s30, %s4443_s14 }
  0x1e   : > { %p4452_p0 = scmp.lt.u32.totalorder %s4443_s14, %s4744_s6 }
  0x1f   : > { %p4447_p10 = pneg %p4446_p9  ;;  %p4451_p13 = por %p4450_p12, %p4449_p11 }
  0x21   : > { %p4453_p1 = por %p4452_p0, %p4451_p13 }
  0x23   : > { %p4454_p2 = pnand %p4453_p1, %p4447_p10 }
  0x25   : > { %4457 = shalt.err (!%p4454_p2)
}
  0x26   : > { %s4458_s25 = scalar_lea.vmem %s4747_s8, 4096  ;;  %s4651_s7 = smov [#allocation8]  }
  0x27   : > { %p4459_p3 = scmp.ne.s32.totalorder %s4747_s8, %s4458_s25  ;;  %s4463_s10 = sshll.u32 %s4651_s7, 4  ;;  %s4464_s10 = int_to_ptr.vmem [resolvable:$false] %s4463_s10 }
  0x28   : > { %s4465_s11 = scalar_lea.vmem %s4464_s10, 8192  ;;  %p4466_p7 = scmp.lt.s32.totalorder %s4747_s8, %s4464_s10 }
  0x29   : > { %p4461_p4 = pnand %p4459_p3, %p4766_p8  ;;  %p4467_p9 = scmp.lt.s32.totalorder %s4465_s11, %s4458_s25 }
  0x2b   : > { %p4462_p5 = pneg %p4461_p4  ;;  %p4468_p11 = por %p4467_p9, %p4466_p7 }
  0x2d   : > { %p4469_p12 = pnand %p4468_p11, %p4462_p5 }
  0x2f   : > { %4472 = shalt.err (!%p4469_p12)
}
  0x30   : > { %s5691_s14 = smov 384   ;;  %s5692_s23 = smov 128  }
  0x31   : > { %s4654_s24 = smov 8   ;;  %s4794_s30 = sadd.s32 4294967295, %s4649_s20  }
  0x32   : > { %3927 = dma.hbm_to_vmem [thread:$0]  (!%p4751_p6), %s4744_s6, 4096, %s4747_s8, %s4760_s13, %s5691_s14, %s5692_s23, %s4654_s24  }
  0x33   : > { %p91_p10 = scmp.ne.s32.totalorder %s4633_s16, %s4629_s15  ;;  %p5694_p13 = scmp.eq.s32.totalorder %s4794_s30, 0 }
  0x34   : > { %p3588_p0 = scmp.ge.s32.totalorder %s4649_s20, 1  ;;  %p182_p1 = scmp.lt.s32.totalorder %s4649_s20, 4 }
  0x35   : > { %p4803_p2 = por %p5694_p13, %p91_p10  ;;  %s4655_s8 = smov [#allocation5]  }
  0x36   : > { %p4807_p3 = pnand %p3588_p0, %p182_p1  ;;  %s200_s29 = sshll.u32 %s4655_s8, 4  ;;  %s4813_s29 = int_to_ptr.vmem [resolvable:$true] %s200_s29 }
  0x37   : > { %s5736_s5 = scalar_select %p4803_p2, 1, 0 }
  0x38   : > { %s5737_s6 = scalar_select %p4807_p3, 1, 0 }
  0x39   : > { %p3920_p4 = pneg %p4807_p3  ;;  %s242_s15 = scalar_lea.vmem [#allocation10], %s4738_s28 }
  0x3a   : > { %s252_s25 = sshll.u32 %s242_s15, 4  ;;  %s4473_s10 = scalar_lea.hbm %s4758_s12, 4096  ;;  %s4822_s25 = int_to_ptr.vmem [resolvable:$true] %s252_s25 }
  0x3b   : > { %p4818_p5 = pnand %p3920_p4, %p5694_p13  ;;  %p4474_p7 = scmp.ne.s32.totalorder %s4758_s12, %s4473_s10 }
  0x3c   : > { %s4478_s26 = scalar_lea.hbm %s5734_s2, 12288  ;;  %p4479_p12 = scmp.lt.u32.totalorder %s4758_s12, %s5734_s2 }
  0x3d   : > { %s5738_s7 = scalar_select %p4818_p5, 1, 0 }
  0x3e   : > { %p4476_p9 = pnand %p4474_p7, %p4766_p8  ;;  %p4480_p10 = scmp.lt.u32.totalorder %s4478_s26, %s4473_s10 }
  0x3f   : > { %p4482_p1 = scmp.lt.u32.totalorder %s4473_s10, %s4758_s12 }
  0x40   : > { %p4477_p11 = pneg %p4476_p9  ;;  %p4481_p0 = por %p4480_p10, %p4479_p12 }
  0x42   : > { %p4483_p4 = por %p4482_p1, %p4481_p0 }
  0x44   : > { %p4484_p13 = pnand %p4483_p4, %p4477_p11 }
  0x46   : > { %4487 = shalt.err (!%p4484_p13)
}
  0x47   : > { %s4488_s15 = scalar_lea.vmem %s4822_s25, 4096  ;;  %s4656_s11 = smov [#allocation10]  }
  0x48   : > { %p4489_p7 = scmp.ne.s32.totalorder %s4822_s25, %s4488_s15  ;;  %s4493_s8 = sshll.u32 %s4656_s11, 4  ;;  %s4494_s8 = int_to_ptr.vmem [resolvable:$false] %s4493_s8 }
  0x49   : > { %s4495_s14 = scalar_lea.vmem %s4494_s8, 8192  ;;  %p4496_p3 = scmp.lt.s32.totalorder %s4822_s25, %s4494_s8 }
  0x4a   : > { %p4491_p9 = pnand %p4489_p7, %p4766_p8  ;;  %p4497_p5 = scmp.lt.s32.totalorder %s4495_s14, %s4488_s15 }
  0x4c   : > { %p4492_p2 = pneg %p4491_p9  ;;  %p4498_p12 = por %p4497_p5, %p4496_p3 }
  0x4e   : > { %p4499_p10 = pnand %p4498_p12, %p4492_p2 }
  0x50   : > { %4502 = shalt.err (!%p4499_p10)
}
  0x51   : > { %s5739_s26 = smov 128   ;;  %s5740_s23 = smov 384  }
  0x52   : > { %3930 = dma.hbm_to_vmem [thread:$0]  (!%p4751_p6), %s4758_s12, 4096, %s4822_s25, %s4760_s13, %s5740_s23, %s5739_s26, %s4654_s24  }
  0x53   : > { %s4503_s11 = scalar_lea.hbm %s5685_s0, 4096  ;;  %p5741_p2 = scmp.ne.s32.totalorder %s5738_s7, 0 }
  0x54   : > { %p4504_p13 = scmp.ne.s32.totalorder %s5685_s0, %s4503_s11  ;;  %p4510_p0 = scmp.lt.u32.totalorder %s4503_s11, %s5685_s0 }
  0x55   : > { %p4505_p3 = pneg %p5741_p2 }
  0x57   : > { %p4506_p5 = pnand %p4505_p3, %p4504_p13 }
  0x59   : > { %p4507_p11 = pneg %p4506_p5 }
  0x5b   : > { %p4512_p1 = pnand %p4510_p0, %p4507_p11 }
  0x5d   : > { %4515 = shalt.err (!%p4512_p1)
}
  0x5e   : > { %s4516_s12 = scalar_lea.vmem %s4813_s29, 4096  ;;  %p4524_p12 = scmp.lt.s32.totalorder %s4813_s29, %s4813_s29 }
  0x5f   : > { %p4517_p4 = scmp.ne.s32.totalorder %s4813_s29, %s4516_s12  ;;  %p4525_p10 = scmp.lt.s32.totalorder %s4516_s12, %s4516_s12 }
  0x61   : > { %p4519_p7 = pnand %p4517_p4, %p4505_p3  ;;  %p4526_p6 = por %p4525_p10, %p4524_p12 }
  0x63   : > { %p4520_p9 = pneg %p4519_p7 }
  0x65   : > { %p4527_p8 = pnand %p4526_p6, %p4520_p9 }
  0x67   : > { %4530 = shalt.err (!%p4527_p8)
}
  0x68   : > { %3923 = dma.hbm_to_vmem [thread:$0]  (!%p5741_p2), %s5685_s0, 4096, %s4813_s29, [#allocation6], %s5739_s26, %s5739_s26, %s4654_s24  }
  0x69   : > { %s3839_s13 = sshll.u32 %s4645_s19, 12  ;;  %s266_s25 = scalar_lea.vmem [#allocation11], %s4738_s28 }
  0x6a   : > { %s274_s23 = sshll.u32 %s266_s25, 4  ;;  %s4878_s8 = scalar_lea.hbm %s5688_s3, %s3839_s13  ;;  %s4880_s23 = int_to_ptr.vmem [resolvable:$true] %s274_s23 }
  0x6b   : > { %s5742_s7 = sand.u32 1, %s4637_s17   ;;  %s4531_s14 = scalar_lea.hbm %s4878_s8, 4096 }
  0x6c   : > { %s4884_s15 = scalar_lea.sflag [#allocation12], %s5742_s7  ;;  %p4532_p6 = scmp.ne.s32.totalorder %s4878_s8, %s4531_s14 }
  0x6d   : > { %p5743_p8 = scmp.ne.s32.totalorder %s5735_s22, 0  ;;  %s4536_s12 = scalar_lea.hbm %s5688_s3, 12288 }
  0x6e   : > { %p4537_p3 = scmp.lt.u32.totalorder %s4878_s8, %s5688_s3  ;;  %p4538_p5 = scmp.lt.u32.totalorder %s4536_s12, %s4531_s14 }
  0x6f   : > { %p4534_p13 = pnand %p4532_p6, %p5743_p8  ;;  %p4540_p0 = scmp.lt.u32.totalorder %s4531_s14, %s4878_s8 }
  0x70   : > { %p4539_p11 = por %p4538_p5, %p4537_p3 }
  0x71   : > { %p4535_p2 = pneg %p4534_p13 }
  0x72   : > { %p4541_p1 = por %p4540_p0, %p4539_p11 }
  0x74   : > { %p4542_p4 = pnand %p4541_p1, %p4535_p2 }
  0x76   : > { %4545 = shalt.err (!%p4542_p4)
}
  0x77   : > { %s4546_s13 = scalar_lea.vmem %s4880_s23, 4096  ;;  %s4657_s25 = smov [#allocation11]  }
  0x78   : > { %p4547_p7 = scmp.ne.s32.totalorder %s4880_s23, %s4546_s13  ;;  %s4551_s10 = sshll.u32 %s4657_s25, 4  ;;  %s4552_s10 = int_to_ptr.vmem [resolvable:$false] %s4551_s10 }
  0x79   : > { %s4553_s11 = scalar_lea.vmem %s4552_s10, 8192  ;;  %p4554_p10 = scmp.lt.s32.totalorder %s4880_s23, %s4552_s10 }
  0x7a   : > { %p4549_p9 = pnand %p4547_p7, %p5743_p8  ;;  %p4555_p6 = scmp.lt.s32.totalorder %s4553_s11, %s4546_s13 }
  0x7c   : > { %p4550_p12 = pneg %p4549_p9  ;;  %p4556_p13 = por %p4555_p6, %p4554_p10 }
  0x7e   : > { %p4557_p3 = pnand %p4556_p13, %p4550_p12 }
  0x80   : > { %4560 = shalt.err (!%p4557_p3)
}
  0x81   : > { %p5744_p2 = scmp.ne.s32.totalorder %s5733_s9, 0  ;;  %p5745_p8 = scmp.ne.s32.totalorder %s5737_s6, 0 }
  0x83   : > { %3933 = dma.hbm_to_vmem [thread:$0]  (!%p5744_p2), %s4878_s8, 4096, %s4880_s23, %s4884_s15, %s5739_s26, %s5739_s26, %s4654_s24  }
  0x84   : > { %286 = sbr.rel (%p5745_p8) target bundleno = 931 (0x3a3), region = 36 }
  0x8b   : > { %p5746_p5 = scmp.eq.s32.totalorder %s4794_s30, 0 }
  0x8d   : > { %4612 = dma.done.wait (%p5746_p5), [#allocation6], 4096   ;;  %p5747_p11 = pmov %p5746_p5 }
  0x8e   : > { %s292_s9 = sand.u32 1, %s4794_s30   ;;  %s294_s22 = sand.u32 1, %s4633_s16  }
  0x8f   : > { %4614 = vsyncadd (%p5747_p11), [#allocation6], 4294963200  ;;  %s3603_s7 = sshll.u32 %s294_s22, 8  ;;  %s293_s14 = scalar_lea.sflag [#allocation9], %s292_s9 }
  0x90   : > { %s4919_s28 = scalar_lea.vmem [#allocation8], %s3603_s7  ;;  %p5748_p0 = scmp.ne.s32.totalorder %s5736_s5, 0 }
  0x92   : > { %4616 = dma.done.wait (%p5748_p0), %s293_s14, 8192  }
  0x93   : > { %4618 = vsyncadd (%p5748_p0), %s293_s14, 4294959104  ;;  %s4925_s24 = scalar_lea.vmem [#allocation10], %s3603_s7  ;;  %s311_s6 = scalar_lea.sflag [#allocation12], %s294_s22 }
  0x94   : > { %s4927_s26 = scalar_lea.vmem [#allocation11], %s3603_s7 }
  0x95   : > { %4620 = dma.done.wait (%p5748_p0), %s311_s6, 4096  }
  0x96   : > { %4622 = vsyncadd (%p5748_p0), %s311_s6, 4294963200  ;;  %p352_p1 = scmp.eq.s32.totalorder %s4641_s18, 0 }
  0x97   : > { %v4658_v0 = vmov (%p352_p1), 0.0  }
  0x98   : > { %357 = sbr.rel (!%p352_p1) target bundleno = 184 (0xb8), region = 56  ;;  %358 = vst [vmem:[#allocation4] sm:$0xff] (%p352_p1), %v4658_v0  ;;  %359 = vst [vmem:[#allocation4 + $0x8] sm:$0xff] (%p352_p1), %v4658_v0 }
  0x99   : > { %360 = vst [vmem:[#allocation4 + $0x10] sm:$0xff] (%p352_p1), %v4658_v0  ;;  %361 = vst [vmem:[#allocation4 + $0x18] sm:$0xff] (%p352_p1), %v4658_v0 }
  0x9a   : > { %362 = vst [vmem:[#allocation4 + $0x20] sm:$0xff] (%p352_p1), %v4658_v0  ;;  %363 = vst [vmem:[#allocation4 + $0x28] sm:$0xff] (%p352_p1), %v4658_v0 }
  0x9b   : > { %364 = vst [vmem:[#allocation4 + $0x30] sm:$0xff] (%p352_p1), %v4658_v0  ;;  %365 = vst [vmem:[#allocation4 + $0x38] sm:$0xff] (%p352_p1), %v4658_v0 }
  0x9c   : > { %366 = vst [vmem:[#allocation4 + $0x40] sm:$0xff] (%p352_p1), %v4658_v0  ;;  %367 = vst [vmem:[#allocation4 + $0x48] sm:$0xff] (%p352_p1), %v4658_v0 }
  0x9d   : > { %368 = vst [vmem:[#allocation4 + $0x50] sm:$0xff] (%p352_p1), %v4658_v0  ;;  %369 = vst [vmem:[#allocation4 + $0x58] sm:$0xff] (%p352_p1), %v4658_v0 }
  0x9e   : > { %370 = vst [vmem:[#allocation4 + $0x60] sm:$0xff] (%p352_p1), %v4658_v0  ;;  %371 = vst [vmem:[#allocation4 + $0x68] sm:$0xff] (%p352_p1), %v4658_v0 }
  0x9f   : > { %372 = vst [vmem:[#allocation4 + $0x70] sm:$0xff] %v4658_v0  ;;  %373 = vst [vmem:[#allocation4 + $0x78] sm:$0xff] %v4658_v0 }
  0xa0   : > { %374 = vst [vmem:[#allocation4 + $0x80] sm:$0xff] %v4658_v0  ;;  %375 = vst [vmem:[#allocation4 + $0x88] sm:$0xff] %v4658_v0 }
  0xa1   : > { %376 = vst [vmem:[#allocation4 + $0x90] sm:$0xff] %v4658_v0  ;;  %377 = vst [vmem:[#allocation4 + $0x98] sm:$0xff] %v4658_v0 }
  0xa2   : > { %378 = vst [vmem:[#allocation4 + $0xa0] sm:$0xff] %v4658_v0  ;;  %379 = vst [vmem:[#allocation4 + $0xa8] sm:$0xff] %v4658_v0 }
  0xa3   : > { %380 = vst [vmem:[#allocation4 + $0xb0] sm:$0xff] %v4658_v0  ;;  %381 = vst [vmem:[#allocation4 + $0xb8] sm:$0xff] %v4658_v0 }
  0xa4   : > { %382 = vst [vmem:[#allocation4 + $0xc0] sm:$0xff] %v4658_v0  ;;  %383 = vst [vmem:[#allocation4 + $0xc8] sm:$0xff] %v4658_v0 }
  0xa5   : > { %384 = vst [vmem:[#allocation4 + $0xd0] sm:$0xff] %v4658_v0  ;;  %385 = vst [vmem:[#allocation4 + $0xd8] sm:$0xff] %v4658_v0 }
  0xa6   : > { %386 = vst [vmem:[#allocation4 + $0xe0] sm:$0xff] %v4658_v0  ;;  %387 = vst [vmem:[#allocation4 + $0xe8] sm:$0xff] %v4658_v0 }
  0xa7   : > { %388 = vst [vmem:[#allocation4 + $0xf0] sm:$0xff] %v4658_v0  ;;  %389 = vst [vmem:[#allocation4 + $0xf8] sm:$0xff] %v4658_v0 }
  0xa8   : > { %390 = vst [vmem:[#allocation4 + $0x100] sm:$0xff] %v4658_v0  ;;  %391 = vst [vmem:[#allocation4 + $0x108] sm:$0xff] %v4658_v0 }
  0xa9   : > { %392 = vst [vmem:[#allocation4 + $0x110] sm:$0xff] %v4658_v0  ;;  %393 = vst [vmem:[#allocation4 + $0x118] sm:$0xff] %v4658_v0 }
  0xaa   : > { %394 = vst [vmem:[#allocation4 + $0x120] sm:$0xff] %v4658_v0  ;;  %395 = vst [vmem:[#allocation4 + $0x128] sm:$0xff] %v4658_v0 }
  0xab   : > { %396 = vst [vmem:[#allocation4 + $0x130] sm:$0xff] %v4658_v0  ;;  %397 = vst [vmem:[#allocation4 + $0x138] sm:$0xff] %v4658_v0 }
  0xac   : > { %398 = vst [vmem:[#allocation4 + $0x140] sm:$0xff] %v4658_v0  ;;  %399 = vst [vmem:[#allocation4 + $0x148] sm:$0xff] %v4658_v0 }
  0xad   : > { %400 = vst [vmem:[#allocation4 + $0x150] sm:$0xff] %v4658_v0  ;;  %401 = vst [vmem:[#allocation4 + $0x158] sm:$0xff] %v4658_v0 }
  0xae   : > { %402 = vst [vmem:[#allocation4 + $0x160] sm:$0xff] %v4658_v0  ;;  %403 = vst [vmem:[#allocation4 + $0x168] sm:$0xff] %v4658_v0 }
  0xaf   : > { %404 = vst [vmem:[#allocation4 + $0x170] sm:$0xff] %v4658_v0  ;;  %405 = vst [vmem:[#allocation4 + $0x178] sm:$0xff] %v4658_v0 }
  0xb0   : > { %406 = vst [vmem:[#allocation4 + $0x180] sm:$0xff] %v4658_v0  ;;  %407 = vst [vmem:[#allocation4 + $0x188] sm:$0xff] %v4658_v0 }
  0xb1   : > { %408 = vst [vmem:[#allocation4 + $0x190] sm:$0xff] %v4658_v0  ;;  %409 = vst [vmem:[#allocation4 + $0x198] sm:$0xff] %v4658_v0 }
  0xb2   : > { %410 = vst [vmem:[#allocation4 + $0x1a0] sm:$0xff] %v4658_v0  ;;  %411 = vst [vmem:[#allocation4 + $0x1a8] sm:$0xff] %v4658_v0 }
  0xb3   : > { %412 = vst [vmem:[#allocation4 + $0x1b0] sm:$0xff] %v4658_v0  ;;  %413 = vst [vmem:[#allocation4 + $0x1b8] sm:$0xff] %v4658_v0 }
  0xb4   : > { %414 = vst [vmem:[#allocation4 + $0x1c0] sm:$0xff] %v4658_v0  ;;  %415 = vst [vmem:[#allocation4 + $0x1c8] sm:$0xff] %v4658_v0 }
  0xb5   : > { %416 = vst [vmem:[#allocation4 + $0x1d0] sm:$0xff] %v4658_v0  ;;  %417 = vst [vmem:[#allocation4 + $0x1d8] sm:$0xff] %v4658_v0 }
  0xb6   : > { %418 = vst [vmem:[#allocation4 + $0x1e0] sm:$0xff] %v4658_v0  ;;  %419 = vst [vmem:[#allocation4 + $0x1e8] sm:$0xff] %v4658_v0 }
  0xb7   : > { %420 = vst [vmem:[#allocation4 + $0x1f0] sm:$0xff] %v4658_v0  ;;  %421 = vst [vmem:[#allocation4 + $0x1f8] sm:$0xff] %v4658_v0 }
  0xb8 PF: > { %v3995_v1 = vld [vmem:[%s4919_s28 + $0x4] ss:$8 sps:$4 sm:$0xff]   ;;  %v3997_v2 = vld [vmem:[%s4919_s28] ss:$8 sps:$4 sm:$0xff]   ;;  %v3998_v3 = vld [vmem:[%s4919_s28 + $0x14] ss:$8 sps:$4 sm:$0xff]  }
  0xb9   : > { %3874 = vmatprep.subr.bf16.mxu1 %v3995_v1  ;;  %1001 = vmatprep.subr.bf16.mxu0 %v3995_v1  ;;  %v4000_v4 = vld [vmem:[%s4919_s28 + $0x10] ss:$8 sps:$4 sm:$0xff]   ;;  %v4001_v5 = vld [vmem:[%s4919_s28 + $0x24] ss:$8 sps:$4 sm:$0xff]   ;;  %v4003_v6 = vld [vmem:[%s4919_s28 + $0x20] ss:$8 sps:$4 sm:$0xff]  }
  0xba   : > { %3890 = vmatpush1.bf16.msra.mxu1 %v3997_v2  ;;  %1002 = vmatpush1.bf16.msra.mxu0 %v3997_v2  ;;  %v4004_v7 = vld [vmem:[%s4919_s28 + $0x34] ss:$8 sps:$4 sm:$0xff]   ;;  %v4006_v8 = vld [vmem:[%s4919_s28 + $0x30] ss:$8 sps:$4 sm:$0xff]   ;;  %v4007_v9 = vld [vmem:[%s4919_s28 + $0x44] ss:$8 sps:$4 sm:$0xff]  }
  0xbb   : > { %3875 = vmatprep.subr.bf16.mxu1 %v3998_v3  ;;  %1003 = vmatprep.subr.bf16.mxu0 %v3998_v3  ;;  %v4009_v10 = vld [vmem:[%s4919_s28 + $0x40] ss:$8 sps:$4 sm:$0xff]   ;;  %v4010_v11 = vld [vmem:[%s4919_s28 + $0x54] ss:$8 sps:$4 sm:$0xff]   ;;  %v4012_v12 = vld [vmem:[%s4919_s28 + $0x50] ss:$8 sps:$4 sm:$0xff]  }
  0xbc   : > { %v4013_v13 = vld [vmem:[%s4919_s28 + $0x64] ss:$8 sps:$4 sm:$0xff]   ;;  %v4015_v15 = vld [vmem:[%s4919_s28 + $0x60] ss:$8 sps:$4 sm:$0xff]   ;;  %v4016_v16 = vld [vmem:[%s4919_s28 + $0x74] ss:$8 sps:$4 sm:$0xff]  }
  0xbd   : > { %v5011_v14 = vld [vmem:[#allocation5 + $0x84] ss:$8 sps:$4 sm:$0xff]   ;;  %v4018_v18 = vld [vmem:[%s4919_s28 + $0x70] ss:$8 sps:$4 sm:$0xff]   ;;  %v4021_v20 = vld [vmem:[%s4919_s28 + $0x80] ss:$8 sps:$4 sm:$0xff]  }
  0xbe   : > { %3891 = vmatpush1.bf16.msra.mxu1 %v4000_v4  ;;  %1004 = vmatpush1.bf16.msra.mxu0 %v4000_v4  ;;  %v5016_v17 = vld [vmem:[#allocation5 + $0x4] ss:$8 sps:$4 sm:$0xff]   ;;  %v4022_v21 = vld [vmem:[%s4919_s28 + $0x94] ss:$8 sps:$4 sm:$0xff]   ;;  %v4024_v22 = vld [vmem:[%s4919_s28 + $0x90] ss:$8 sps:$4 sm:$0xff]  }
  0xbf   : > { %3876 = vmatprep.subr.bf16.mxu1 %v4001_v5  ;;  %1005 = vmatprep.subr.bf16.mxu0 %v4001_v5  ;;  %v4019_v19 = vld [vmem:[%s4919_s28 + $0x84] ss:$8 sps:$4 sm:$0xff]   ;;  %v4027_v24 = vld [vmem:[%s4919_s28 + $0xa0] ss:$8 sps:$4 sm:$0xff]   ;;  %v4028_v25 = vld [vmem:[%s4919_s28 + $0xb4] ss:$8 sps:$4 sm:$0xff]  }
  0xc0   : > { %1113 = vmatprep.mubr.bf16.mxu1 %v5011_v14  ;;  %1033 = vmatprep.mubr.bf16.mxu0 %v5016_v17  ;;  %v4025_v23 = vld [vmem:[%s4919_s28 + $0xa4] ss:$8 sps:$4 sm:$0xff]   ;;  %v4030_v26 = vld [vmem:[%s4919_s28 + $0xb0] ss:$8 sps:$4 sm:$0xff]   ;;  %v4033_v28 = vld [vmem:[%s4919_s28 + $0xc0] ss:$8 sps:$4 sm:$0xff]  }
  0xc1   : > { %v4031_v27 = vld [vmem:[%s4919_s28 + $0xc4] ss:$8 sps:$4 sm:$0xff]   ;;  %v4034_v29 = vld [vmem:[%s4919_s28 + $0xd4] ss:$8 sps:$4 sm:$0xff]   ;;  %v4036_v30 = vld [vmem:[%s4919_s28 + $0xd0] ss:$8 sps:$4 sm:$0xff]  }
  0xc2   : > { %3892 = vmatpush1.bf16.msra.mxu1 %v4003_v6  ;;  %1006 = vmatpush1.bf16.msra.mxu0 %v4003_v6  ;;  %v4037_v31 = vld [vmem:[%s4919_s28 + $0xe4] ss:$8 sps:$4 sm:$0xff]   ;;  %v4039_v32 = vld [vmem:[%s4919_s28 + $0xe0] ss:$8 sps:$4 sm:$0xff]   ;;  %v4040_v33 = vld [vmem:[%s4919_s28 + $0xf4] ss:$8 sps:$4 sm:$0xff]  }
  0xc3   : > { %3877 = vmatprep.subr.bf16.mxu1 %v4004_v7  ;;  %1007 = vmatprep.subr.bf16.mxu0 %v4004_v7  ;;  %v4042_v34 = vld [vmem:[%s4919_s28 + $0xf0] ss:$8 sps:$4 sm:$0xff]   ;;  %v5036_v35 = vld [vmem:[#allocation5 + $0x80] ss:$8 sps:$4 sm:$0xff]   ;;  %v4048_v36 = vld [vmem:[%s4925_s24 + $0x4] ss:$8 sps:$4 sm:$0xff]  }
  0xc4   : > { %v4046_v37 = vld [vmem:[%s4925_s24] ss:$8 sps:$4 sm:$0xff]   ;;  %v4051_v38 = vld [vmem:[%s4925_s24 + $0x14] ss:$8 sps:$4 sm:$0xff]   ;;  %v4049_v42 = vld [vmem:[%s4925_s24 + $0x10] ss:$8 sps:$4 sm:$0xff]  }
  0xc5   : > { %v5041_v39 = vld [vmem:[#allocation5] ss:$8 sps:$4 sm:$0xff]   ;;  %v5043_v40 = vld [vmem:[#allocation5 + $0x94] ss:$8 sps:$4 sm:$0xff]   ;;  %v4060_v43 = vld [vmem:[%s4925_s24 + $0x24] ss:$8 sps:$4 sm:$0xff]  }
  0xc6   : > { %3893 = vmatpush1.bf16.msra.mxu1 %v4006_v8  ;;  %1008 = vmatpush1.bf16.msra.mxu0 %v4006_v8  ;;  %v5045_v41 = vld [vmem:[#allocation5 + $0x14] ss:$8 sps:$4 sm:$0xff]   ;;  %v5052_v44 = vld [vmem:[#allocation5 + $0x90] ss:$8 sps:$4 sm:$0xff]   ;;  %v4058_v46 = vld [vmem:[%s4925_s24 + $0x20] ss:$8 sps:$4 sm:$0xff]  }
  0xc7   : > { %3878 = vmatprep.subr.bf16.mxu1 %v4007_v9  ;;  %1009 = vmatprep.subr.bf16.mxu0 %v4007_v9  ;;  %v5055_v45 = vld [vmem:[#allocation5 + $0x10] ss:$8 sps:$4 sm:$0xff]   ;;  %v5058_v47 = vld [vmem:[#allocation5 + $0xa4] ss:$8 sps:$4 sm:$0xff]   ;;  %v4063_v48 = vld [vmem:[%s4925_s24 + $0x34] ss:$8 sps:$4 sm:$0xff]  }
  0xc8   : > { %v5061_v49 = vld [vmem:[#allocation5 + $0x24] ss:$8 sps:$4 sm:$0xff]   ;;  %v4061_v50 = vld [vmem:[%s4925_s24 + $0x30] ss:$8 sps:$4 sm:$0xff]   ;;  %v5069_v52 = vld [vmem:[#allocation5 + $0xa0] ss:$8 sps:$4 sm:$0xff]  }
  0xc9   : > { %v4072_v51 = vld [vmem:[%s4925_s24 + $0x44] ss:$8 sps:$4 sm:$0xff]   ;;  %v5071_v53 = vld [vmem:[#allocation5 + $0x20] ss:$8 sps:$4 sm:$0xff]   ;;  %v5074_v55 = vld [vmem:[#allocation5 + $0xb4] ss:$8 sps:$4 sm:$0xff]  }
  0xca   : > { %3894 = vmatpush1.bf16.msra.mxu1 %v4009_v10  ;;  %1010 = vmatpush1.bf16.msra.mxu0 %v4009_v10  ;;  %v4070_v54 = vld [vmem:[%s4925_s24 + $0x40] ss:$8 sps:$4 sm:$0xff]   ;;  %v4075_v56 = vld [vmem:[%s4925_s24 + $0x54] ss:$8 sps:$4 sm:$0xff]   ;;  %v4073_v58 = vld [vmem:[%s4925_s24 + $0x50] ss:$8 sps:$4 sm:$0xff]  }
  0xcb   : > { %3879 = vmatprep.subr.bf16.mxu1 %v4010_v11  ;;  %1011 = vmatprep.subr.bf16.mxu0 %v4010_v11  ;;  %v5077_v57 = vld [vmem:[#allocation5 + $0x34] ss:$8 sps:$4 sm:$0xff]   ;;  %v4084_v59 = vld [vmem:[%s4925_s24 + $0x64] ss:$8 sps:$4 sm:$0xff]   ;;  %v5085_v60 = vld [vmem:[#allocation5 + $0xb0] ss:$8 sps:$4 sm:$0xff]  }
  0xcc   : > { %v5087_v61 = vld [vmem:[#allocation5 + $0x30] ss:$8 sps:$4 sm:$0xff]   ;;  %v4082_v62 = vld [vmem:[%s4925_s24 + $0x60] ss:$8 sps:$4 sm:$0xff]   ;;  %v5090_v63 = vld [vmem:[#allocation5 + $0xc4] ss:$8 sps:$4 sm:$0xff]  }
  0xcd   : > { %v4087_v0 = vld [vmem:[%s4925_s24 + $0x74] ss:$8 sps:$4 sm:$0xff]   ;;  %v5093_v1 = vld [vmem:[#allocation5 + $0x44] ss:$8 sps:$4 sm:$0xff]   ;;  %v4085_v2 = vld [vmem:[%s4925_s24 + $0x70] ss:$8 sps:$4 sm:$0xff]  }
  0xce   : > { %3895 = vmatpush1.bf16.msra.mxu1 %v4012_v12  ;;  %1012 = vmatpush1.bf16.msra.mxu0 %v4012_v12  ;;  %v4096_v3 = vld [vmem:[%s4925_s24 + $0x84] ss:$8 sps:$4 sm:$0xff]   ;;  %v5101_v4 = vld [vmem:[#allocation5 + $0xc0] ss:$8 sps:$4 sm:$0xff]   ;;  %v5106_v7 = vld [vmem:[#allocation5 + $0xd4] ss:$8 sps:$4 sm:$0xff]  }
  0xcf   : > { %3880 = vmatprep.subr.bf16.mxu1 %v4013_v13  ;;  %1013 = vmatprep.subr.bf16.mxu0 %v4013_v13  ;;  %v5103_v5 = vld [vmem:[#allocation5 + $0x40] ss:$8 sps:$4 sm:$0xff]   ;;  %v4099_v8 = vld [vmem:[%s4925_s24 + $0x94] ss:$8 sps:$4 sm:$0xff]   ;;  %v4097_v10 = vld [vmem:[%s4925_s24 + $0x90] ss:$8 sps:$4 sm:$0xff]  }
  0xd0   : > { %v4094_v6 = vld [vmem:[%s4925_s24 + $0x80] ss:$8 sps:$4 sm:$0xff]   ;;  %v5109_v9 = vld [vmem:[#allocation5 + $0x54] ss:$8 sps:$4 sm:$0xff]   ;;  %v4108_v11 = vld [vmem:[%s4925_s24 + $0xa4] ss:$8 sps:$4 sm:$0xff]  }
  0xd1   : > { %v5117_v12 = vld [vmem:[#allocation5 + $0xd0] ss:$8 sps:$4 sm:$0xff]   ;;  %p3151_p4 = scmp.eq.s32.totalorder %s4641_s18, 2 }
  0xd2   : > { %3896 = vmatpush1.bf16.msra.mxu1 %v4015_v15  ;;  %1014 = vmatpush1.bf16.msra.mxu0 %v4015_v15  ;;  %v4116_v13 = vld [vmem:[#allocation5 + $0x50] ss:$8 sps:$4 sm:$0xff]   ;;  %v4106_v15 = vld [vmem:[%s4925_s24 + $0xa0] ss:$8 sps:$4 sm:$0xff]  }
  0xd3   : > { %3881 = vmatprep.subr.bf16.mxu1 %v4016_v16  ;;  %1015 = vmatprep.subr.bf16.mxu0 %v4016_v16  ;;  %v5120_v16 = vld [vmem:[#allocation5 + $0xe4] ss:$8 sps:$4 sm:$0xff]  }
  0xd6   : > { %3897 = vmatpush1.bf16.msra.mxu1 %v4018_v18  ;;  %1016 = vmatpush1.bf16.msra.mxu0 %v4018_v18  ;;  %v4111_v18 = vld [vmem:[%s4925_s24 + $0xb4] ss:$8 sps:$4 sm:$0xff]  }
  0xd7   : > { %3882 = vmatprep.subr.bf16.mxu1 %v4019_v19  ;;  %1017 = vmatprep.subr.bf16.mxu0 %v4019_v19  ;;  %v4124_v19 = vld [vmem:[#allocation5 + $0x64] ss:$8 sps:$4 sm:$0xff]  }
  0xda   : > { %3898 = vmatpush1.bf16.msra.mxu1 %v4021_v20  ;;  %1018 = vmatpush1.bf16.msra.mxu0 %v4021_v20  ;;  %v4109_v20 = vld [vmem:[%s4925_s24 + $0xb0] ss:$8 sps:$4 sm:$0xff]  }
  0xdb   : > { %3883 = vmatprep.subr.bf16.mxu1 %v4022_v21  ;;  %1019 = vmatprep.subr.bf16.mxu0 %v4022_v21  ;;  %v4120_v21 = vld [vmem:[%s4925_s24 + $0xc4] ss:$8 sps:$4 sm:$0xff]  }
  0xde   : > { %3899 = vmatpush1.bf16.msra.mxu1 %v4024_v22  ;;  %1020 = vmatpush1.bf16.msra.mxu0 %v4024_v22  ;;  %v5127_v22 = vld [vmem:[#allocation5 + $0xe0] ss:$8 sps:$4 sm:$0xff]  }
  0xdf   : > { %3884 = vmatprep.subr.bf16.mxu1 %v4025_v23  ;;  %1021 = vmatprep.subr.bf16.mxu0 %v4025_v23  ;;  %v4128_v23 = vld [vmem:[#allocation5 + $0x60] ss:$8 sps:$4 sm:$0xff]  }
  0xe2   : > { %3900 = vmatpush1.bf16.msra.mxu1 %v4027_v24  ;;  %1022 = vmatpush1.bf16.msra.mxu0 %v4027_v24  ;;  %v4118_v24 = vld [vmem:[%s4925_s24 + $0xc0] ss:$8 sps:$4 sm:$0xff]  }
  0xe3   : > { %3885 = vmatprep.subr.bf16.mxu1 %v4028_v25  ;;  %1023 = vmatprep.subr.bf16.mxu0 %v4028_v25  ;;  %v5130_v25 = vld [vmem:[#allocation5 + $0xf4] ss:$8 sps:$4 sm:$0xff]  }
  0xe6   : > { %3901 = vmatpush1.bf16.msra.mxu1 %v4030_v26  ;;  %1024 = vmatpush1.bf16.msra.mxu0 %v4030_v26  ;;  %v4123_v26 = vld [vmem:[%s4925_s24 + $0xd4] ss:$8 sps:$4 sm:$0xff]  }
  0xe7   : > { %3886 = vmatprep.subr.bf16.mxu1 %v4031_v27  ;;  %1025 = vmatprep.subr.bf16.mxu0 %v4031_v27  ;;  %v4136_v27 = vld [vmem:[#allocation5 + $0x74] ss:$8 sps:$4 sm:$0xff]  }
  0xea   : > { %3902 = vmatpush1.bf16.msra.mxu1 %v4033_v28  ;;  %1026 = vmatpush1.bf16.msra.mxu0 %v4033_v28  ;;  %v4121_v28 = vld [vmem:[%s4925_s24 + $0xd0] ss:$8 sps:$4 sm:$0xff]  }
  0xeb   : > { %3887 = vmatprep.subr.bf16.mxu1 %v4034_v29  ;;  %1027 = vmatprep.subr.bf16.mxu0 %v4034_v29  ;;  %v4132_v29 = vld [vmem:[%s4925_s24 + $0xe4] ss:$8 sps:$4 sm:$0xff]  }
  0xee   : > { %3903 = vmatpush1.bf16.msra.mxu1 %v4036_v30  ;;  %1028 = vmatpush1.bf16.msra.mxu0 %v4036_v30  ;;  %v5137_v30 = vld [vmem:[#allocation5 + $0xf0] ss:$8 sps:$4 sm:$0xff]  }
  0xef   : > { %3888 = vmatprep.subr.bf16.mxu1 %v4037_v31  ;;  %1029 = vmatprep.subr.bf16.mxu0 %v4037_v31  ;;  %v4138_v31 = vld [vmem:[#allocation5 + $0x70] ss:$8 sps:$4 sm:$0xff]  }
  0xf2   : > { %3904 = vmatpush1.bf16.msra.mxu1 %v4039_v32  ;;  %1030 = vmatpush1.bf16.msra.mxu0 %v4039_v32  ;;  %v4130_v32 = vld [vmem:[%s4925_s24 + $0xe0] ss:$8 sps:$4 sm:$0xff]  }
  0xf3   : > { %3889 = vmatprep.subr.bf16.mxu1 %v4040_v33  ;;  %1031 = vmatprep.subr.bf16.mxu0 %v4040_v33  ;;  %v4135_v33 = vld [vmem:[%s4925_s24 + $0xf4] ss:$8 sps:$4 sm:$0xff]  }
  0xf6   : > { %3905 = vmatpush1.bf16.msra.mxu1 %v4042_v34  ;;  %1032 = vmatpush1.bf16.msra.mxu0 %v4042_v34  ;;  %v4133_v34 = vld [vmem:[%s4925_s24 + $0xf0] ss:$8 sps:$4 sm:$0xff]  }
  0xf7   : > { %1578 = vmatprep.subr.bf16.mxu1 %v4048_v36  ;;  %v4139_v36 = vld [vmem:[%s4927_s26] ss:$8 sps:$4 sm:$0xff]  }
  0xf9   : > { %1114 = vmatmul.mubr.bf16.vlgmr.msra.gmra.mrb[0].mxu1 %v5036_v35  ;;  %1034 = vmatmul.mubr.bf16.vlgmr.msra.gmra.mrb[0].mxu0 %v5041_v39 }
  0xfa   : > { %1579 = vmatpush1.bf16.msra.mxu1 %v4046_v37  ;;  %1123 = vmatprep.mubr.bf16.mxu1 %v5043_v40  ;;  %v4144_v37 = vld [vmem:[%s4927_s26 + $0x14] ss:$8 sps:$4 sm:$0xff]  }
  0xfb   : > { %1580 = vmatprep.subr.bf16.mxu1 %v4051_v38  ;;  %1043 = vmatprep.mubr.bf16.mxu0 %v5045_v41  ;;  %v4142_v38 = vld [vmem:[%s4927_s26 + $0x10] ss:$8 sps:$4 sm:$0xff]  }
  0xfe   : > { %1581 = vmatpush1.bf16.msra.mxu1 %v4049_v42  ;;  %v4150_v42 = vld [vmem:[%s4927_s26 + $0x34] ss:$8 sps:$4 sm:$0xff]  }
  0xff   : > { %1582 = vmatprep.subr.bf16.mxu1 %v4060_v43  ;;  %v4148_v43 = vld [vmem:[%s4927_s26 + $0x30] ss:$8 sps:$4 sm:$0xff]  }
 0x101   : > { %1124 = vmatmul.mubr.bf16.gmra.mrb[4].mxu1 %v5052_v44  ;;  %1044 = vmatmul.mubr.bf16.gmra.mrb[4].mxu0 %v5055_v45 }
 0x102   : > { %1583 = vmatpush1.bf16.msra.mxu1 %v4058_v46  ;;  %1133 = vmatprep.mubr.bf16.mxu1 %v5058_v47  ;;  %v4151_v46 = vld [vmem:[%s4927_s26 + $0x40] ss:$8 sps:$4 sm:$0xff]  }
 0x103   : > { %1584 = vmatprep.subr.bf16.mxu1 %v4063_v48  ;;  %1053 = vmatprep.mubr.bf16.mxu0 %v5061_v49  ;;  %v4156_v48 = vld [vmem:[%s4927_s26 + $0x54] ss:$8 sps:$4 sm:$0xff]  }
 0x106   : > { %1585 = vmatpush1.bf16.msra.mxu1 %v4061_v50  ;;  %v4159_v50 = vld [vmem:[%s4927_s26 + $0x64] ss:$8 sps:$4 sm:$0xff]  }
 0x107   : > { %1586 = vmatprep.subr.bf16.mxu1 %v4072_v51  ;;  %v4168_v51 = vld [vmem:[%s4927_s26 + $0x94] ss:$8 sps:$4 sm:$0xff]  }
 0x109   : > { %1134 = vmatmul.mubr.bf16.gmra.mrb[8].mxu1 %v5069_v52  ;;  %1054 = vmatmul.mubr.bf16.gmra.mrb[8].mxu0 %v5071_v53 }
 0x10a   : > { %1587 = vmatpush1.bf16.msra.mxu1 %v4070_v54  ;;  %1143 = vmatprep.mubr.bf16.mxu1 %v5074_v55  ;;  %v4169_v54 = vld [vmem:[%s4927_s26 + $0xa0] ss:$8 sps:$4 sm:$0xff]  }
 0x10b   : > { %1588 = vmatprep.subr.bf16.mxu1 %v4075_v56  ;;  %1063 = vmatprep.mubr.bf16.mxu0 %v5077_v57  ;;  %v4172_v56 = vld [vmem:[%s4927_s26 + $0xb0] ss:$8 sps:$4 sm:$0xff]  }
 0x10e   : > { %1589 = vmatpush1.bf16.msra.mxu1 %v4073_v58  ;;  %v4175_v58 = vld [vmem:[%s4927_s26 + $0xc0] ss:$8 sps:$4 sm:$0xff]  }
 0x10f   : > { %1590 = vmatprep.subr.bf16.mxu1 %v4084_v59  ;;  %v4180_v59 = vld [vmem:[%s4927_s26 + $0xd4] ss:$8 sps:$4 sm:$0xff]  }
 0x111   : > { %1144 = vmatmul.mubr.bf16.gmra.mrb[12].mxu1 %v5085_v60  ;;  %1064 = vmatmul.mubr.bf16.gmra.mrb[12].mxu0 %v5087_v61 }
 0x112   : > { %1591 = vmatpush1.bf16.msra.mxu1 %v4082_v62  ;;  %1153 = vmatprep.mubr.bf16.mxu1 %v5090_v63  ;;  %v4181_v62 = vld [vmem:[%s4927_s26 + $0xe0] ss:$8 sps:$4 sm:$0xff]  }
 0x113   : > { %1592 = vmatprep.subr.bf16.mxu1 %v4087_v0  ;;  %1073 = vmatprep.mubr.bf16.mxu0 %v5093_v1  ;;  %v4184_v0 = vld [vmem:[%s4927_s26 + $0xf0] ss:$8 sps:$4 sm:$0xff]  }
 0x116   : > { %1593 = vmatpush1.bf16.msra.mxu1 %v4085_v2 }
 0x117   : > { %1594 = vmatprep.subr.bf16.mxu1 %v4096_v3 }
 0x119   : > { %1154 = vmatmul.mubr.bf16.gmra.mrb[16].mxu1 %v5101_v4  ;;  %1074 = vmatmul.mubr.bf16.gmra.mrb[16].mxu0 %v5103_v5 }
 0x11a   : > { %1595 = vmatpush1.bf16.msra.mxu1 %v4094_v6  ;;  %1163 = vmatprep.mubr.bf16.mxu1 %v5106_v7 }
 0x11b   : > { %1596 = vmatprep.subr.bf16.mxu1 %v4099_v8  ;;  %1083 = vmatprep.mubr.bf16.mxu0 %v5109_v9 }
 0x11e   : > { %1597 = vmatpush1.bf16.msra.mxu1 %v4097_v10 }
 0x11f   : > { %1598 = vmatprep.subr.bf16.mxu1 %v4108_v11 }
 0x121   : > { %1164 = vmatmul.mubr.bf16.gmra.mrb[20].mxu1 %v5117_v12  ;;  %1084 = vmatmul.mubr.bf16.gmra.mrb[20].mxu0 %v4116_v13 }
 0x122   : > { %1599 = vmatpush1.bf16.msra.mxu1 %v4106_v15  ;;  %1173 = vmatprep.mubr.bf16.mxu1 %v5120_v16 }
 0x123   : > { %1600 = vmatprep.subr.bf16.mxu1 %v4111_v18  ;;  %1093 = vmatprep.mubr.bf16.mxu0 %v4124_v19 }
 0x126   : > { %1601 = vmatpush1.bf16.msra.mxu1 %v4109_v20 }
 0x127   : > { %1602 = vmatprep.subr.bf16.mxu1 %v4120_v21 }
 0x129   : > { %1174 = vmatmul.mubr.bf16.gmra.mrb[24].mxu1 %v5127_v22  ;;  %1094 = vmatmul.mubr.bf16.gmra.mrb[24].mxu0 %v4128_v23 }
 0x12a   : > { %1603 = vmatpush1.bf16.msra.mxu1 %v4118_v24  ;;  %1183 = vmatprep.mubr.bf16.mxu1 %v5130_v25 }
 0x12b   : > { %1604 = vmatprep.subr.bf16.mxu1 %v4123_v26  ;;  %1103 = vmatprep.mubr.bf16.mxu0 %v4136_v27 }
 0x12e   : > { %1605 = vmatpush1.bf16.msra.mxu1 %v4121_v28 }
 0x12f   : > { %1606 = vmatprep.subr.bf16.mxu1 %v4132_v29 }
 0x131   : > { %1184 = vmatmul.mubr.bf16.gmra.mrb[28].mxu1 %v5137_v30  ;;  %1104 = vmatmul.mubr.bf16.gmra.mrb[28].mxu0 %v4138_v31 }
 0x132   : > { %1607 = vmatpush1.bf16.msra.mxu1 %v4130_v32  ;;  %1610 = vmatprep.mubr.bf16.mxu1 %v5016_v17  ;;  %v4141_v17 = vld [vmem:[%s4927_s26 + $0x4] ss:$8 sps:$4 sm:$0xff]  }
 0x133   : > { %1608 = vmatprep.subr.bf16.mxu1 %v4135_v33  ;;  %2830 = vmatprep.subr.bf16.mxu0 %v4141_v17 }
 0x134   : > { %2831 = vmatpush1.bf16.msra.mxu0 %v4139_v36 }
 0x135   : > { %2832 = vmatprep.subr.bf16.mxu0 %v4144_v37 }
 0x136   : > { %1609 = vmatpush1.bf16.msra.mxu1 %v4133_v34 }
 0x138   : > { %2833 = vmatpush1.bf16.msra.mxu0 %v4142_v38 }
 0x139   : > { %1611 = vmatmul.mubr.bf16.vlgmr.msra.gmra.mrb[32].mxu1 %v5041_v39  ;;  %v4147_v39 = vld [vmem:[%s4927_s26 + $0x24] ss:$8 sps:$4 sm:$0xff]  }
 0x13a   : > { %1620 = vmatprep.mubr.bf16.mxu1 %v5045_v41  ;;  %v4145_v41 = vld [vmem:[%s4927_s26 + $0x20] ss:$8 sps:$4 sm:$0xff]   ;;  %2834 = vmatprep.subr.bf16.mxu0 %v4147_v39 }
 0x13c   : > { %2835 = vmatpush1.bf16.msra.mxu0 %v4145_v41 }
 0x13d   : > { %2836 = vmatprep.subr.bf16.mxu0 %v4150_v42 }
 0x140   : > { %2837 = vmatpush1.bf16.msra.mxu0 %v4148_v43 }
 0x141   : > { %1621 = vmatmul.mubr.bf16.gmra.mrb[36].mxu1 %v5055_v45  ;;  %v4153_v45 = vld [vmem:[%s4927_s26 + $0x44] ss:$8 sps:$4 sm:$0xff]  }
 0x142   : > { %1630 = vmatprep.mubr.bf16.mxu1 %v5061_v49  ;;  %2838 = vmatprep.subr.bf16.mxu0 %v4153_v45  ;;  %v4154_v49 = vld [vmem:[%s4927_s26 + $0x50] ss:$8 sps:$4 sm:$0xff]  }
 0x144   : > { %2839 = vmatpush1.bf16.msra.mxu0 %v4151_v46 }
 0x145   : > { %2840 = vmatprep.subr.bf16.mxu0 %v4156_v48 }
 0x148   : > { %2841 = vmatpush1.bf16.msra.mxu0 %v4154_v49 }
 0x149   : > { %1631 = vmatmul.mubr.bf16.gmra.mrb[40].mxu1 %v5071_v53  ;;  %2842 = vmatprep.subr.bf16.mxu0 %v4159_v50  ;;  %v4171_v53 = vld [vmem:[%s4927_s26 + $0xa4] ss:$8 sps:$4 sm:$0xff]  }
 0x14a   : > { %1640 = vmatprep.mubr.bf16.mxu1 %v5077_v57  ;;  %v4177_v57 = vld [vmem:[%s4927_s26 + $0xc4] ss:$8 sps:$4 sm:$0xff]  }
 0x151   : > { %1641 = vmatmul.mubr.bf16.gmra.mrb[44].mxu1 %v5087_v61  ;;  %v4183_v61 = vld [vmem:[%s4927_s26 + $0xe4] ss:$8 sps:$4 sm:$0xff]  }
 0x152   : > { %1650 = vmatprep.mubr.bf16.mxu1 %v5093_v1 }
 0x159   : > { %1651 = vmatmul.mubr.bf16.gmra.mrb[48].mxu1 %v5103_v5 }
 0x15a   : > { %1660 = vmatprep.mubr.bf16.mxu1 %v5109_v9 }
 0x161   : > { %1661 = vmatmul.mubr.bf16.gmra.mrb[52].mxu1 %v4116_v13 }
 0x162   : > { %1670 = vmatprep.mubr.bf16.mxu1 %v4124_v19 }
 0x169   : > { %1671 = vmatmul.mubr.bf16.gmra.mrb[56].mxu1 %v4128_v23 }
 0x16a   : > { %1680 = vmatprep.mubr.bf16.mxu1 %v4136_v27 }
 0x171   : > { %1681 = vmatmul.mubr.bf16.gmra.mrb[60].mxu1 %v4138_v31 }
 0x172   : > { %1690 = vmatprep.mubr.bf16.mxu1 %v5011_v14  ;;  %v4157_v14 = vld [vmem:[%s4927_s26 + $0x60] ss:$8 sps:$4 sm:$0xff]  }
 0x173   : > { %2843 = vmatpush1.bf16.msra.mxu0 %v4157_v14 }
 0x179   : > { %1691 = vmatmul.mubr.bf16.gmra.mrb[64].mxu1 %v5036_v35  ;;  %v4162_v35 = vld [vmem:[%s4927_s26 + $0x74] ss:$8 sps:$4 sm:$0xff]  }
 0x17a   : > { %1700 = vmatprep.mubr.bf16.mxu1 %v5043_v40  ;;  %v4160_v40 = vld [vmem:[%s4927_s26 + $0x70] ss:$8 sps:$4 sm:$0xff]   ;;  %2844 = vmatprep.subr.bf16.mxu0 %v4162_v35 }
 0x17b   : > { %2845 = vmatpush1.bf16.msra.mxu0 %v4160_v40 }
 0x181   : > { %1701 = vmatmul.mubr.bf16.gmra.mrb[68].mxu1 %v5052_v44  ;;  %v4165_v44 = vld [vmem:[%s4927_s26 + $0x84] ss:$8 sps:$4 sm:$0xff]  }
 0x182   : > { %1710 = vmatprep.mubr.bf16.mxu1 %v5058_v47  ;;  %v4163_v47 = vld [vmem:[%s4927_s26 + $0x80] ss:$8 sps:$4 sm:$0xff]   ;;  %2846 = vmatprep.subr.bf16.mxu0 %v4165_v44 }
 0x183   : > { %2847 = vmatpush1.bf16.msra.mxu0 %v4163_v47 }
 0x184   : > { %2848 = vmatprep.subr.bf16.mxu0 %v4168_v51 }
 0x189   : > { %1711 = vmatmul.mubr.bf16.gmra.mrb[72].mxu1 %v5069_v52  ;;  %v4166_v52 = vld [vmem:[%s4927_s26 + $0x90] ss:$8 sps:$4 sm:$0xff]  }
 0x18a   : > { %1720 = vmatprep.mubr.bf16.mxu1 %v5074_v55  ;;  %2849 = vmatpush1.bf16.msra.mxu0 %v4166_v52  ;;  %v4174_v55 = vld [vmem:[%s4927_s26 + $0xb4] ss:$8 sps:$4 sm:$0xff]  }
 0x18b   : > { %2850 = vmatprep.subr.bf16.mxu0 %v4171_v53 }
 0x18e   : > { %2851 = vmatpush1.bf16.msra.mxu0 %v4169_v54 }
 0x18f   : > { %2852 = vmatprep.subr.bf16.mxu0 %v4174_v55 }
 0x191   : > { %1721 = vmatmul.mubr.bf16.gmra.mrb[76].mxu1 %v5085_v60  ;;  %v4178_v60 = vld [vmem:[%s4927_s26 + $0xd0] ss:$8 sps:$4 sm:$0xff]  }
 0x192   : > { %1730 = vmatprep.mubr.bf16.mxu1 %v5090_v63  ;;  %2853 = vmatpush1.bf16.msra.mxu0 %v4172_v56  ;;  %v4186_v63 = vld [vmem:[%s4927_s26 + $0xf4] ss:$8 sps:$4 sm:$0xff]  }
 0x193   : > { %2854 = vmatprep.subr.bf16.mxu0 %v4177_v57 }
 0x196   : > { %2855 = vmatpush1.bf16.msra.mxu0 %v4175_v58 }
 0x197   : > { %2856 = vmatprep.subr.bf16.mxu0 %v4180_v59 }
 0x199   : > { %1731 = vmatmul.mubr.bf16.gmra.mrb[80].mxu1 %v5101_v4 }
 0x19a   : > { %1740 = vmatprep.mubr.bf16.mxu1 %v5106_v7  ;;  %2857 = vmatpush1.bf16.msra.mxu0 %v4178_v60 }
 0x19b   : > { %2858 = vmatprep.subr.bf16.mxu0 %v4183_v61 }
 0x19e   : > { %2859 = vmatpush1.bf16.msra.mxu0 %v4181_v62 }
 0x19f   : > { %2860 = vmatprep.subr.bf16.mxu0 %v4186_v63 }
 0x1a1   : > { %1741 = vmatmul.mubr.bf16.gmra.mrb[84].mxu1 %v5117_v12 }
 0x1a2   : > { %1750 = vmatprep.mubr.bf16.mxu1 %v5120_v16  ;;  %2861 = vmatpush1.bf16.msra.mxu0 %v4184_v0 }
 0x1a9   : > { %1751 = vmatmul.mubr.bf16.gmra.mrb[88].mxu1 %v5127_v22 }
 0x1aa   : > { %1760 = vmatprep.mubr.bf16.mxu1 %v5130_v25 }
 0x1b1   : > { %1761 = vmatmul.mubr.bf16.gmra.mrb[92].mxu1 %v5137_v30 }
 0x1cc   : > { %v5202_v1 = vpop.f32.mrb[0].mxu1  ;;  %v5204_v2 = vpop.f32.mrb[0].mxu0 }
 0x1cd   : > { %5749 = vst [vmem:[#allocation18_spill] sm:$0xff] %v5202_v1  ;;  %v5206_v3 = vpop.f32.mrb[1].mxu1  ;;  %v5208_v4 = vpop.f32.mrb[1].mxu0  ;;  %v3703_v32 = vmul.f32 -1.442695, %v5204_v2 }
 0x1ce   : > { %5750 = vst [vmem:[#allocation19_spill] sm:$0xff] %v5206_v3  ;;  %v5210_v5 = vpop.f32.mrb[2].mxu1  ;;  %v5212_v6 = vpop.f32.mrb[2].mxu0  ;;  %v3704_v36 = vmul.f32 -1.442695, %v5208_v4 }
 0x1cf   : > { %5751 = vst [vmem:[#allocation20_spill] sm:$0xff] %v5210_v5  ;;  %v5214_v7 = vpop.f32.mrb[3].mxu1  ;;  %v5216_v8 = vpop.f32.mrb[3].mxu0  ;;  %4187 = vpow2.f32 %v3703_v32  ;;  %v3705_v37 = vmul.f32 -1.442695, %v5212_v6 }
 0x1d0   : > { %5752 = vst [vmem:[#allocation21_spill] sm:$0xff] %v5214_v7  ;;  %v3706_v38 = vmul.f32 -1.442695, %v5216_v8  ;;  %4189 = vpow2.f32 %v3704_v36  ;;  %v3735_v35 = vmul.f32 -1.442695, %v5202_v1 }
 0x1d1   : > { %4191 = vpow2.f32 %v3705_v37  ;;  %v3736_v44 = vmul.f32 -1.442695, %v5206_v3  ;;  %v3737_v51 = vmul.f32 -1.442695, %v5210_v5  ;;  %v3738_v55 = vmul.f32 -1.442695, %v5214_v7 }
 0x1d2   : > { %4193 = vpow2.f32 %v3706_v38 }
 0x1d4   : > { %v5218_v9 = vpop.f32.mrb[4].mxu1  ;;  %v5220_v10 = vpop.f32.mrb[4].mxu0 }
 0x1d5   : > { %5753 = vst [vmem:[#allocation22_spill] sm:$0xff] %v5218_v9  ;;  %v5222_v11 = vpop.f32.mrb[5].mxu1  ;;  %v5224_v12 = vpop.f32.mrb[5].mxu0  ;;  %v3707_v42 = vmul.f32 -1.442695, %v5220_v10 }
 0x1d6   : > { %5754 = vst [vmem:[#allocation23_spill] sm:$0xff] %v5222_v11  ;;  %v5226_v13 = vpop.f32.mrb[6].mxu1  ;;  %v5228_v15 = vpop.f32.mrb[6].mxu0  ;;  %v3708_v49 = vmul.f32 -1.442695, %v5224_v12 }
 0x1d7   : > { %v5230_v16 = vpop.f32.mrb[7].mxu1  ;;  %v5232_v18 = vpop.f32.mrb[7].mxu0  ;;  %4195 = vpow2.f32 %v3707_v42  ;;  %v3709_v40 = vmul.f32 -1.442695, %v5228_v15  ;;  %v3739_v57 = vmul.f32 -1.442695, %v5218_v9 }
 0x1d8   : > { %4197 = vpow2.f32 %v3708_v49  ;;  %v3710_v47 = vmul.f32 -1.442695, %v5232_v18 }
 0x1d9   : > { %4199 = vpow2.f32 %v3735_v35  ;;  %v4188_v54 = vpop.eup %4187 }
 0x1da   : > { %4201 = vpow2.f32 %v3709_v40  ;;  %v4190_v60 = vpop.eup %4189  ;;  %v2222_v63 = vadd.f32 1.0, %v4188_v54 }
 0x1db   : > { %4203 = vpow2.f32 %v3736_v44  ;;  %v4192_v32 = vpop.eup %4191  ;;  %v2223_v42 = vadd.f32 1.0, %v4190_v60 }
 0x1dc   : > { %v5234_v19 = vpop.f32.mrb[8].mxu1  ;;  %v5236_v20 = vpop.f32.mrb[8].mxu0  ;;  %4205 = vpow2.f32 %v3710_v47  ;;  %v2224_v40 = vadd.f32 1.0, %v4192_v32 }
 0x1dd   : > { %v5238_v21 = vpop.f32.mrb[9].mxu1  ;;  %v5242_v23 = vpop.f32.mrb[9].mxu0  ;;  %v3711_v61 = vmul.f32 -1.442695, %v5236_v20  ;;  %4207 = vpow2.f32 %v3737_v51 }
 0x1de   : > { %v5240_v22 = vpop.f32.mrb[10].mxu1  ;;  %v5246_v25 = vpop.f32.mrb[10].mxu0  ;;  %4209 = vpow2.f32 %v3738_v55  ;;  %v3712_v36 = vmul.f32 -1.442695, %v5242_v23 }
 0x1df   : > { %v5244_v24 = vpop.f32.mrb[11].mxu1  ;;  %v5248_v26 = vpop.f32.mrb[11].mxu0  ;;  %4211 = vpow2.f32 %v3739_v57  ;;  %v3713_v35 = vmul.f32 -1.442695, %v5246_v25 }
 0x1e0   : > { %v4194_v38 = vpop.eup %4193  ;;  %4213 = vpow2.f32 %v3711_v61 }
 0x1e1   : > { %v4196_v49 = vpop.eup %4195  ;;  %4215 = vrcp.f32 %v2222_v63  ;;  %v2225_v54 = vadd.f32 1.0, %v4194_v38  ;;  %v3714_v63 = vmul.f32 -1.442695, %v5248_v26 }
 0x1e2   : > { %v4198_v51 = vpop.eup %4197  ;;  %4217 = vpow2.f32 %v3712_v36  ;;  %v2226_v57 = vadd.f32 1.0, %v4196_v49 }
 0x1e3   : > { %4219 = vrcp.f32 %v2223_v42  ;;  %v2227_v36 = vadd.f32 1.0, %v4198_v51 }
 0x1e4   : > { %v5250_v27 = vpop.f32.mrb[12].mxu1  ;;  %v5252_v28 = vpop.f32.mrb[12].mxu0  ;;  %4221 = vpow2.f32 %v3713_v35 }
 0x1e5   : > { %v5254_v29 = vpop.f32.mrb[13].mxu1  ;;  %v5258_v31 = vpop.f32.mrb[13].mxu0  ;;  %4223 = vrcp.f32 %v2224_v40  ;;  %v3715_v42 = vmul.f32 -1.442695, %v5252_v28 }
 0x1e6   : > { %v5256_v30 = vpop.f32.mrb[14].mxu1  ;;  %v5263_v34 = vpop.f32.mrb[14].mxu0  ;;  %4225 = vrcp.f32 %v2225_v54 }
 0x1e7   : > { %v5261_v33 = vpop.f32.mrb[15].mxu1  ;;  %v5265_v17 = vpop.f32.mrb[15].mxu0  ;;  %4227 = vrcp.f32 %v2226_v57  ;;  %v3717_v9 = vmul.f32 -1.442695, %v5263_v34 }
 0x1e8   : > { %5755 = vst [vmem:[#allocation24_spill] sm:$0xff] %v5261_v33  ;;  %4229 = vpow2.f32 %v3714_v63  ;;  %v3740_v63 = vmul.f32 -1.442695, %v5222_v11 }
 0x1ec   : > { %v5270_v39 = vpop.f32.mrb[16].mxu1  ;;  %v5272_v41 = vpop.f32.mrb[16].mxu0 }
 0x1ed   : > { %5756 = vst [vmem:[#allocation25_spill] sm:$0xff] %v5270_v39  ;;  %v5275_v43 = vpop.f32.mrb[17].mxu1  ;;  %v5277_v45 = vpop.f32.mrb[17].mxu0  ;;  %v3719_v11 = vmul.f32 -1.442695, %v5272_v41 }
 0x1ee   : > { %5757 = vst [vmem:[#allocation26_spill] sm:$0xff] %v5275_v43  ;;  %v5279_v46 = vpop.f32.mrb[18].mxu1  ;;  %v5281_v48 = vpop.f32.mrb[18].mxu0 }
 0x1ef   : > { %5758 = vst [vmem:[#allocation27_spill] sm:$0xff] %v5279_v46  ;;  %v5284_v50 = vpop.f32.mrb[19].mxu1  ;;  %v5286_v14 = vpop.f32.mrb[19].mxu0 }
 0x1f0   : > { %5759 = vst [vmem:[#allocation28_spill] sm:$0xff] %v5284_v50 }
 0x1f4   : > { %v5293_v52 = vpop.f32.mrb[20].mxu1  ;;  %v5295_v53 = vpop.f32.mrb[20].mxu0 }
 0x1f5   : > { %5760 = vst [vmem:[#allocation29_spill] sm:$0xff] %v5293_v52  ;;  %v5298_v56 = vpop.f32.mrb[21].mxu1  ;;  %v5303_v59 = vpop.f32.mrb[21].mxu0 }
 0x1f6   : > { %5761 = vst [vmem:[#allocation30_spill] sm:$0xff] %v5298_v56  ;;  %v5301_v58 = vpop.f32.mrb[22].mxu1  ;;  %v5308_v0 = vpop.f32.mrb[22].mxu0 }
 0x1f7   : > { %5762 = vst [vmem:[#allocation31_spill] sm:$0xff] %v5301_v58  ;;  %v5306_v62 = vpop.f32.mrb[23].mxu1  ;;  %v5311_v37 = vpop.f32.mrb[23].mxu0 }
 0x1f8   : > { %5763 = vst [vmem:[#allocation32_spill] sm:$0xff] %v5306_v62  ;;  %v5320_v62 = vpop.eup %4199  ;;  %4231 = vrcp.f32 %v2227_v36 }
 0x1f9   : > { %v4202_v58 = vpop.eup %4201  ;;  %4233 = vpow2.f32 %v3715_v42 }
 0x1fa   : > { %v2228_v35 = vadd.f32 1.0, %v4202_v58 }
 0x1fc   : > { %v5314_v44 = vpop.f32.mrb[24].mxu1  ;;  %v5316_v47 = vpop.f32.mrb[24].mxu0 }
 0x1fd   : > { %5764 = vst [vmem:[#allocation33_spill] sm:$0xff] %v5314_v44  ;;  %v5318_v55 = vpop.f32.mrb[25].mxu1  ;;  %v5324_v61 = vpop.f32.mrb[25].mxu0 }
 0x1fe   : > { %5765 = vst [vmem:[#allocation34_spill] sm:$0xff] %v5318_v55  ;;  %v5322_v60 = vpop.f32.mrb[26].mxu1  ;;  %v5329_v44 = vpop.eup %4203  ;;  %4235 = vrcp.f32 %v2228_v35 }
 0x1ff   : > { %5766 = vst [vmem:[#allocation35_spill] sm:$0xff] %v5322_v60  ;;  %v5327_v32 = vpop.f32.mrb[27].mxu1  ;;  %v5331_v38 = vpop.f32.mrb[26].mxu0 }
 0x200   : > { %5767 = vst [vmem:[#allocation36_spill] sm:$0xff] %v5327_v32  ;;  %v4206_v55 = vpop.eup %4205  ;;  %v5334_v49 = vpop.f32.mrb[27].mxu0  ;;  %v3716_v32 = vmul.f32 -1.442695, %v5258_v31 }
 0x201   : > { %5768 = vst [vmem:[#allocation37_spill] sm:$0xff] %v5334_v49  ;;  %v5336_v60 = vpop.eup %4207  ;;  %v2229_v40 = vadd.f32 1.0, %v4206_v55 }
 0x202   : > { %v5338_v56 = vpop.eup %4209  ;;  %4237 = vpow2.f32 %v3716_v32  ;;  %v3720_v32 = vmul.f32 -1.442695, %v5277_v45 }
 0x203   : > { %v5341_v52 = vpop.eup %4211  ;;  %4239 = vrcp.f32 %v2229_v40 }
 0x204   : > { %v5343_v51 = vpop.f32.mrb[28].mxu1  ;;  %v5345_v54 = vpop.f32.mrb[28].mxu0  ;;  %4241 = vpow2.f32 %v3717_v9 }
 0x205   : > { %5769 = vst [vmem:[#allocation38_spill] sm:$0xff] %v5343_v51  ;;  %5770 = vst [vmem:[#allocation39_spill] sm:$0xff] %v5345_v54  ;;  %v4214_v50 = vpop.eup %4213  ;;  %v5348_v7 = vpop.f32.mrb[29].mxu1  ;;  %v3718_v51 = vmul.f32 -1.442695, %v5265_v17  ;;  %4243 = vpow2.f32 %v3740_v63 }
 0x206   : > { %5771 = vst [vmem:[#allocation40_spill] sm:$0xff] %v5348_v7  ;;  %v5350_v58 = vpop.f32.mrb[29].mxu0  ;;  %v4216_v57 = vpop.eup %4215  ;;  %v2230_v7 = vadd.f32 1.0, %v4214_v50 }
 0x207   : > { %5772 = vst [vmem:[#allocation41_spill] sm:$0xff] %v5350_v58  ;;  %v5353_v5 = vpop.f32.mrb[30].mxu1  ;;  %v5355_v36 = vpop.f32.mrb[30].mxu0  ;;  %v2414_v39 = vmul.f32 %v4216_v57, %v5204_v2  ;;  %4245 = vpow2.f32 %v3718_v51 }
 0x208   : > { %5773 = vst [vmem:[#allocation42_spill] sm:$0xff] %v5353_v5  ;;  %5774 = vst [vmem:[#allocation43_spill] sm:$0xff] %v5355_v36  ;;  %v4218_v55 = vpop.eup %4217  ;;  %v5358_v3 = vpop.f32.mrb[31].mxu1  ;;  %4247 = vrcp.f32 %v2230_v7  ;;  %v3741_v36 = vmul.f32 -1.442695, %v5226_v13 }
 0x209   : > { %5775 = vst [vmem:[#allocation44_spill] sm:$0xff] %v5358_v3  ;;  %v5360_v42 = vpop.f32.mrb[31].mxu0  ;;  %v4220_v1 = vpop.eup %4219  ;;  %v2231_v5 = vadd.f32 1.0, %v4218_v55  ;;  %4249 = vpow2.f32 %v3719_v11 }
 0x20a   : > { %5776 = vst [vmem:[#allocation45_spill] sm:$0xff] %v5360_v42  ;;  %v4222_v46 = vpop.eup %4221  ;;  %v2415_v3 = vmul.f32 %v4220_v1, %v5208_v4  ;;  %v3742_v1 = vmul.f32 -1.442695, %v5230_v16 }
 0x20b   : > { %v4224_v35 = vpop.eup %4223  ;;  %v2232_v42 = vadd.f32 1.0, %v4222_v46  ;;  %4251 = vrcp.f32 %v2231_v5 }
 0x20c   : > { %v4226_v43 = vpop.eup %4225  ;;  %v1612_v40 = vpop.f32.mrb[32].mxu1  ;;  %v2416_v9 = vmul.f32 %v4224_v35, %v5212_v6  ;;  %4253 = vpow2.f32 %v3720_v32  ;;  %v2254_v6 = vadd.f32 1.0, %v5320_v62  ;;  %v2255_v35 = vadd.f32 1.0, %v5329_v44 }
 0x20d   : > { %v4228_v33 = vpop.eup %4227  ;;  %v2478_v63 = vmul.f32 %v2414_v39, %v1612_v40  ;;  %v1614_v55 = vpop.f32.mrb[33].mxu1  ;;  %v2417_v2 = vmul.f32 %v4226_v43, %v5216_v8  ;;  %4255 = vrcp.f32 %v2232_v42  ;;  %v2256_v44 = vadd.f32 1.0, %v5336_v60 }
 0x20e   : > { %v4230_v50 = vpop.eup %4229  ;;  %v2479_v57 = vmul.f32 %v2415_v3, %v1614_v55  ;;  %v1616_v54 = vpop.f32.mrb[34].mxu1  ;;  %v2418_v32 = vmul.f32 %v4228_v33, %v5220_v10  ;;  %v2258_v60 = vadd.f32 1.0, %v5341_v52 }
 0x20f   : > { %v4232_v58 = vpop.eup %4231  ;;  %v2233_v51 = vadd.f32 1.0, %v4230_v50  ;;  %v2480_v4 = vmul.f32 %v2416_v9, %v1616_v54  ;;  %v1618_v7 = vpop.f32.mrb[35].mxu1 }
 0x210   : > { %v4234_v49 = vpop.eup %4233  ;;  %v2481_v11 = vmul.f32 %v2417_v2, %v1618_v7  ;;  %v2419_v62 = vmul.f32 %v4232_v58, %v5224_v12  ;;  %v2257_v58 = vadd.f32 1.0, %v5338_v56 }
 0x211   : > { %v4236_v46 = vpop.eup %4235  ;;  %4257 = vrcp.f32 %v2233_v51  ;;  %v2542_v8 = vpack.c.bf16 %v2480_v4, %v2478_v63  ;;  %v2234_v3 = vadd.f32 1.0, %v4234_v49 }
 0x212   : > { %v4238_v39 = vpop.eup %4237  ;;  %4259 = vpow2.f32 %v3741_v36  ;;  %v2543_v43 = vpack.c.bf16 %v2481_v11, %v2479_v57  ;;  %v2420_v36 = vmul.f32 %v4236_v46, %v5228_v15 }
 0x213   : > { %v4240_v5 = vpop.eup %4239  ;;  %4261 = vpow2.f32 %v3742_v1  ;;  %v2235_v54 = vadd.f32 1.0, %v4238_v39  ;;  %v3721_v39 = vmul.f32 -1.442695, %v5281_v48 }
 0x214   : > { %v4242_v40 = vpop.eup %4241  ;;  %4263 = vrcp.f32 %v2254_v6  ;;  %v1622_v9 = vpop.f32.mrb[36].mxu1  ;;  %2862 = vmatprep.mubr.bf16.mxu0 %v2543_v43  ;;  %v2421_v10 = vmul.f32 %v4240_v5, %v5232_v18  ;;  %v3722_v43 = vmul.f32 -1.442695, %v5286_v14 }
 0x215   : > { %v4244_v50 = vpop.eup %4243  ;;  %v2236_v42 = vadd.f32 1.0, %v4242_v40  ;;  %4265 = vrcp.f32 %v2255_v35  ;;  %v2482_v49 = vmul.f32 %v2418_v32, %v1622_v9  ;;  %v1624_v63 = vpop.f32.mrb[37].mxu1  ;;  %2863 = vmatmul.mubr.bf16.vlgmr.msra.gmra.mrb[32].mxu0 %v2542_v8 }
 0x216   : > { %v4246_v55 = vpop.eup %4245  ;;  %4267 = vrcp.f32 %v2234_v3  ;;  %v2483_v51 = vmul.f32 %v2419_v62, %v1624_v63  ;;  %v1626_v57 = vpop.f32.mrb[38].mxu1  ;;  %v3743_v63 = vmul.f32 -1.442695, %v5234_v19 }
 0x217   : > { %v4248_v2 = vpop.eup %4247  ;;  %v2237_v33 = vadd.f32 1.0, %v4246_v55  ;;  %4269 = vrcp.f32 %v2235_v54  ;;  %v2484_v1 = vmul.f32 %v2420_v36, %v1626_v57  ;;  %v1628_v4 = vpop.f32.mrb[39].mxu1  ;;  %v2259_v54 = vadd.f32 1.0, %v4244_v50 }
 0x218   : > { %v4250_v12 = vpop.eup %4249  ;;  %4271 = vrcp.f32 %v2236_v42  ;;  %v2485_v15 = vmul.f32 %v2421_v10, %v1628_v4  ;;  %v2422_v56 = vmul.f32 %v4248_v2, %v5236_v20  ;;  %v3724_v10 = vmul.f32 -1.442695, %v5303_v59 }
 0x219   : > { %v4252_v7 = vpop.eup %4251  ;;  %4273 = vrcp.f32 %v2237_v33  ;;  %v2238_v6 = vadd.f32 1.0, %v4250_v12  ;;  %v2544_v11 = vpack.c.bf16 %v2484_v1, %v2482_v49 }
 0x21a   : > { %v4254_v46 = vpop.eup %4253  ;;  %4275 = vrcp.f32 %v2256_v44  ;;  %v2545_v35 = vpack.c.bf16 %v2485_v15, %v2483_v51  ;;  %v2423_v52 = vmul.f32 %v4252_v7, %v5242_v23  ;;  %v3723_v44 = vmul.f32 -1.442695, %v5295_v53 }
 0x21b   : > { %v4256_v18 = vpop.eup %4255  ;;  %4277 = vrcp.f32 %v2257_v58  ;;  %v2239_v5 = vadd.f32 1.0, %v4254_v46  ;;  %v3725_v58 = vmul.f32 -1.442695, %v5308_v0  ;;  %v3745_v7 = vmul.f32 -1.442695, %v5240_v22 }
 0x21c   : > { %v4258_v8 = vpop.eup %4257  ;;  %4279 = vrcp.f32 %v2258_v60  ;;  %v1632_v40 = vpop.f32.mrb[40].mxu1  ;;  %2872 = vmatprep.mubr.bf16.mxu0 %v2545_v35  ;;  %v2424_v62 = vmul.f32 %v4256_v18, %v5246_v25 }
 0x21d   : > { %v4260_v3 = vpop.eup %4259  ;;  %4281 = vrcp.f32 %v2238_v6  ;;  %v2486_v42 = vmul.f32 %v2422_v56, %v1632_v40  ;;  %v1634_v9 = vpop.f32.mrb[41].mxu1  ;;  %2873 = vmatmul.mubr.bf16.gmra.mrb[36].mxu0 %v2544_v11  ;;  %v2425_v20 = vmul.f32 %v4258_v8, %v5248_v26  ;;  %v3744_v26 = vmul.f32 -1.442695, %v5238_v21 }
 0x21e   : > { %v4262_v32 = vpop.eup %4261  ;;  %4283 = vpow2.f32 %v3721_v39  ;;  %v2487_v23 = vmul.f32 %v2423_v52, %v1634_v9  ;;  %v1636_v36 = vpop.f32.mrb[42].mxu1  ;;  %v3726_v6 = vmul.f32 -1.442695, %v5311_v37  ;;  %v2260_v39 = vadd.f32 1.0, %v4260_v3 }
 0x21f   : > { %v5384_v55 = vpop.eup %4263  ;;  %4285 = vrcp.f32 %v2239_v5  ;;  %v2488_v50 = vmul.f32 %v2424_v62, %v1636_v36  ;;  %v1638_v25 = vpop.f32.mrb[43].mxu1  ;;  %v3746_v3 = vmul.f32 -1.442695, %v5244_v24 }
 0x220   : > { %v5388_v49 = vpop.eup %4265  ;;  %4287 = vpow2.f32 %v3722_v43  ;;  %v2489_v33 = vmul.f32 %v2425_v20, %v1638_v25 }
 0x221   : > { %v4268_v2 = vpop.eup %4267  ;;  %4289 = vrcp.f32 %v2259_v54  ;;  %v2546_v57 = vpack.c.bf16 %v2488_v50, %v2486_v42 }
 0x222   : > { %v4270_v51 = vpop.eup %4269  ;;  %4291 = vpow2.f32 %v3723_v44  ;;  %v2547_v1 = vpack.c.bf16 %v2489_v33, %v2487_v23  ;;  %v2426_v60 = vmul.f32 %v4268_v2, %v5252_v28  ;;  %v2261_v28 = vadd.f32 1.0, %v4262_v32 }
 0x223   : > { %v4272_v12 = vpop.eup %4271  ;;  %4293 = vpow2.f32 %v3743_v63  ;;  %v2427_v46 = vmul.f32 %v4270_v51, %v5258_v31  ;;  %v3748_v2 = vmul.f32 -1.442695, %v5254_v29 }
 0x224   : > { %v4274_v4 = vpop.eup %4273  ;;  %4295 = vpow2.f32 %v3724_v10  ;;  %v1642_v11 = vpop.f32.mrb[44].mxu1  ;;  %2882 = vmatprep.mubr.bf16.mxu0 %v2547_v1  ;;  %v2428_v35 = vmul.f32 %v4272_v12, %v5263_v34 }
 0x225   : > { %v5396_v15 = vpop.eup %4275  ;;  %4297 = vpow2.f32 %v3744_v26  ;;  %v2490_v8 = vmul.f32 %v2426_v60, %v1642_v11  ;;  %v1644_v56 = vpop.f32.mrb[45].mxu1  ;;  %2883 = vmatmul.mubr.bf16.gmra.mrb[40].mxu0 %v2546_v57  ;;  %v2429_v52 = vmul.f32 %v4274_v4, %v5265_v17  ;;  %v3747_v17 = vmul.f32 -1.442695, %v5250_v27 }
 0x226   : > { %v5400_v18 = vpop.eup %4277  ;;  %4299 = vpow2.f32 %v3725_v58  ;;  %v2491_v31 = vmul.f32 %v2427_v46, %v1644_v56  ;;  %v1646_v43 = vpop.f32.mrb[46].mxu1 }
 0x227   : > { %v5403_v5 = vpop.eup %4279  ;;  %4301 = vpow2.f32 %v3745_v7  ;;  %v2492_v54 = vmul.f32 %v2428_v35, %v1646_v43  ;;  %v1648_v62 = vpop.f32.mrb[47].mxu1 }
 0x228   : > { %v4282_v40 = vpop.eup %4281  ;;  %4303 = vpow2.f32 %v3726_v6  ;;  %v2493_v34 = vmul.f32 %v2429_v52, %v1648_v62  ;;  %v3727_v52 = vmul.f32 -1.442695, %v5316_v47  ;;  %v3728_v62 = vmul.f32 -1.442695, %v5324_v61 }
 0x229   : > { %v4284_v42 = vpop.eup %4283  ;;  %4305 = vrcp.f32 %v2260_v39  ;;  %v2548_v44 = vpack.c.bf16 %v2492_v54, %v2490_v8  ;;  %v2430_v63 = vmul.f32 %v4282_v40, %v5272_v41  ;;  %v3749_v41 = vmul.f32 -1.442695, %v5256_v30 }
 0x22a   : > { %v4286_v9 = vpop.eup %4285  ;;  %v2240_v20 = vadd.f32 1.0, %v4284_v42  ;;  %4307 = vrcp.f32 %v2261_v28  ;;  %v2549_v32 = vpack.c.bf16 %v2493_v34, %v2491_v31 }
 0x22b   : > { %v4288_v23 = vpop.eup %4287  ;;  %v2431_v10 = vmul.f32 %v4286_v9, %v5277_v45 }
 0x22c   : > { %v5408_v36 = vpop.eup %4289  ;;  %4309 = vrcp.f32 %v2240_v20  ;;  %v2241_v50 = vadd.f32 1.0, %v4288_v23  ;;  %v1652_v33 = vpop.f32.mrb[48].mxu1  ;;  %2892 = vmatprep.mubr.bf16.mxu0 %v2549_v32 }
 0x22d   : > { %v4292_v25 = vpop.eup %4291  ;;  %4311 = vpow2.f32 %v3746_v3  ;;  %v5413_v57 = vmul.f32 %v2430_v63, %v1652_v33  ;;  %v1654_v12 = vpop.f32.mrb[49].mxu1  ;;  %2893 = vmatmul.mubr.bf16.gmra.mrb[44].mxu0 %v2548_v44  ;;  %v3729_v44 = vmul.f32 -1.442695, %v5331_v38 }
 0x22e   : > { %v4294_v51 = vpop.eup %4293  ;;  %4313 = vrcp.f32 %v2241_v50  ;;  %v2242_v26 = vadd.f32 1.0, %v4292_v25  ;;  %v5416_v1 = vmul.f32 %v2431_v10, %v1654_v12  ;;  %v1656_v4 = vpop.f32.mrb[50].mxu1  ;;  %v5777_v25 = vld [vmem:[#allocation37_spill] sm:$0xff] }
 0x22f   : > { %v4296_v58 = vpop.eup %4295  ;;  %4315 = vpow2.f32 %v3747_v17  ;;  %v1658_v45 = vpop.f32.mrb[51].mxu1  ;;  %v2262_v6 = vadd.f32 1.0, %v4294_v51 }
 0x230   : > { %v4298_v7 = vpop.eup %4297  ;;  %4317 = vrcp.f32 %v2242_v26  ;;  %v2243_v60 = vadd.f32 1.0, %v4296_v58  ;;  %v5778_v58 = vld [vmem:[#allocation39_spill] sm:$0xff] }
 0x231   : > { %v4300_v46 = vpop.eup %4299  ;;  %4319 = vpow2.f32 %v3748_v2  ;;  %v2263_v8 = vadd.f32 1.0, %v4298_v7  ;;  %v3730_v2 = vmul.f32 -1.442695, %v5777_v25 }
 0x232   : > { %v4302_v11 = vpop.eup %4301  ;;  %4321 = vrcp.f32 %v2243_v60  ;;  %v2244_v39 = vadd.f32 1.0, %v4300_v46 }
 0x233   : > { %v4304_v35 = vpop.eup %4303  ;;  %4323 = vpow2.f32 %v3749_v41  ;;  %v2264_v43 = vadd.f32 1.0, %v4302_v11  ;;  %v3731_v41 = vmul.f32 -1.442695, %v5778_v58 }
 0x234   : > { %v5418_v56 = vpop.eup %4305  ;;  %4325 = vrcp.f32 %v2244_v39  ;;  %v2245_v28 = vadd.f32 1.0, %v4304_v35  ;;  %v1662_v40 = vpop.f32.mrb[52].mxu1 }
 0x235   : > { %v5421_v31 = vpop.eup %4307  ;;  %4327 = vrcp.f32 %v2262_v6  ;;  %v1664_v42 = vpop.f32.mrb[53].mxu1 }
 0x236   : > { %v4310_v54 = vpop.eup %4309  ;;  %4329 = vrcp.f32 %v2245_v28  ;;  %v1666_v9 = vpop.f32.mrb[54].mxu1  ;;  %v5781_v28 = vld [vmem:[#allocation45_spill] sm:$0xff] }
 0x237   : > { %v4312_v3 = vpop.eup %4311  ;;  %4331 = vrcp.f32 %v2263_v8  ;;  %v2432_v34 = vmul.f32 %v4310_v54, %v5281_v48  ;;  %v1668_v23 = vpop.f32.mrb[55].mxu1 }
 0x238   : > { %v4314_v20 = vpop.eup %4313  ;;  %4333 = vpow2.f32 %v3727_v52  ;;  %v2265_v33 = vadd.f32 1.0, %v4312_v3 }
 0x239   : > { %v4316_v17 = vpop.eup %4315  ;;  %4335 = vrcp.f32 %v2264_v43  ;;  %v2433_v32 = vmul.f32 %v4314_v20, %v5286_v14  ;;  %v2496_v63 = vmul.f32 %v2432_v34, %v1656_v4  ;;  %v5779_v4 = vld [vmem:[#allocation41_spill] sm:$0xff] }
 0x23a   : > { %v4318_v50 = vpop.eup %4317  ;;  %4337 = vpow2.f32 %v3728_v62  ;;  %v3732_v60 = vmul.f32 -1.442695, %v5779_v4 }
 0x23b   : > { %v5428_v10 = vpop.eup %4319  ;;  %v2434_v48 = vmul.f32 %v4318_v50, %v5295_v53  ;;  %v2550_v51 = vpack.c.bf16 %v2496_v63, %v5413_v57  ;;  %v2497_v26 = vmul.f32 %v2433_v32, %v1658_v45  ;;  %4339 = vpow2.f32 %v3729_v44  ;;  %v5780_v53 = vld [vmem:[#allocation43_spill] sm:$0xff] }
 0x23c   : > { %v4322_v12 = vpop.eup %4321  ;;  %v5438_v11 = vpop.f32.mrb[56].mxu1  ;;  %4341 = vpow2.f32 %v3730_v2  ;;  %v3733_v57 = vmul.f32 -1.442695, %v5780_v53  ;;  %v5783_v2 = vld [vmem:[#allocation25_spill] sm:$0xff] }
 0x23d   : > { %v5433_v7 = vpop.eup %4323  ;;  %v2435_v14 = vmul.f32 %v4322_v12, %v5303_v59  ;;  %v2551_v46 = vpack.c.bf16 %v2497_v26, %v5416_v1  ;;  %v2498_v6 = vmul.f32 %v2434_v48, %v1662_v40  ;;  %v5441_v45 = vpop.f32.mrb[57].mxu1  ;;  %4343 = vrcp.f32 %v2265_v33  ;;  %v5784_v26 = vld [vmem:[#allocation26_spill] sm:$0xff] }
 0x23e   : > { %v4326_v39 = vpop.eup %4325  ;;  %v3734_v59 = vmul.f32 -1.442695, %v5781_v28  ;;  %v5447_v43 = vpop.f32.mrb[58].mxu1  ;;  %v2266_v40 = vadd.f32 1.0, %v4316_v17  ;;  %4345 = vpow2.f32 %v3731_v41  ;;  %v3751_v33 = vmul.f32 -1.442695, %v5783_v2 }
 0x23f   : > { %v5443_v35 = vpop.eup %4327  ;;  %v2436_v8 = vmul.f32 %v4326_v39, %v5308_v0  ;;  %2902 = vmatprep.mubr.bf16.mxu0 %v2551_v46  ;;  %v2499_v52 = vmul.f32 %v2435_v14, %v1664_v42  ;;  %v5449_v54 = vpop.f32.mrb[59].mxu1  ;;  %4347 = vpow2.f32 %v3732_v60  ;;  %v5782_v0 = vld [vmem:[#allocation24_spill] sm:$0xff]  ;;  %v3752_v12 = vmul.f32 -1.442695, %v5784_v26  ;;  %v5785_v46 = vld [vmem:[#allocation27_spill] sm:$0xff] }
 0x240   : > { %v4330_v1 = vpop.eup %4329  ;;  %2903 = vmatmul.mubr.bf16.gmra.mrb[48].mxu0 %v2550_v51  ;;  %v3750_v44 = vmul.f32 -1.442695, %v5782_v0  ;;  %4349 = vpow2.f32 %v3733_v57 }
 0x241   : > { %v5451_v62 = vpop.eup %4331  ;;  %v2437_v3 = vmul.f32 %v4330_v1, %v5311_v37  ;;  %v2500_v34 = vmul.f32 %v2436_v8, %v1666_v9  ;;  %4351 = vpow2.f32 %v3734_v59 }
 0x242   : > { %v4334_v20 = vpop.eup %4333  ;;  %4353 = vrcp.f32 %v2266_v40  ;;  %v5787_v40 = vld [vmem:[#allocation19_spill] sm:$0xff] }
 0x243   : > { %v5455_v32 = vpop.eup %4335  ;;  %v2246_v42 = vadd.f32 1.0, %v4334_v20  ;;  %v2552_v63 = vpack.c.bf16 %v2500_v34, %v2498_v6  ;;  %v2501_v17 = vmul.f32 %v2437_v3, %v1668_v23  ;;  %v3753_v6 = vmul.f32 -1.442695, %v5785_v46  ;;  %v5788_v20 = vld [vmem:[#allocation20_spill] sm:$0xff] }
 0x244   : > { %v4338_v50 = vpop.eup %4337  ;;  %v5458_v37 = vpop.f32.mrb[60].mxu1  ;;  %v2447_v3 = vmul.f32 %v5388_v49, %v5787_v40 }
 0x245   : > { %4355 = vrcp.f32 %v2246_v42  ;;  %v2247_v48 = vadd.f32 1.0, %v4338_v50  ;;  %v2553_v51 = vpack.c.bf16 %v2501_v17, %v2499_v52  ;;  %v4340_v9 = vpop.eup %4339  ;;  %v5461_v41 = vpop.f32.mrb[61].mxu1  ;;  %v5786_v52 = vld [vmem:[#allocation18_spill] sm:$0xff]  ;;  %v5789_v42 = vld [vmem:[#allocation21_spill] sm:$0xff] }
 0x246   : > { %4357 = vpow2.f32 %v3750_v44  ;;  %v2248_v14 = vadd.f32 1.0, %v4340_v9  ;;  %v5463_v60 = vpop.f32.mrb[62].mxu1  ;;  %v4342_v23 = vpop.eup %4341  ;;  %v2446_v1 = vmul.f32 %v5384_v55, %v5786_v52  ;;  %v2448_v44 = vmul.f32 %v5396_v15, %v5788_v20  ;;  %v5792_v15 = vld [vmem:[#allocation28_spill] sm:$0xff] }
 0x247   : > { %4359 = vrcp.f32 %v2247_v48  ;;  %2912 = vmatprep.mubr.bf16.mxu0 %v2553_v51  ;;  %v5466_v39 = vpop.f32.mrb[63].mxu1  ;;  %v5468_v57 = vpop.eup %4343  ;;  %v2249_v8 = vadd.f32 1.0, %v4342_v23  ;;  %v5791_v51 = vld [vmem:[#allocation23_spill] sm:$0xff] }
 0x248   : > { %4361 = vpow2.f32 %v3751_v33  ;;  %2913 = vmatmul.mubr.bf16.gmra.mrb[52].mxu0 %v2552_v63  ;;  %v4346_v59 = vpop.eup %4345  ;;  %v2449_v63 = vmul.f32 %v5400_v18, %v5789_v42  ;;  %v5790_v33 = vld [vmem:[#allocation22_spill] sm:$0xff]  ;;  %v5482_v55 = vmul.f32 %v5408_v36, %v5791_v51  ;;  %v5795_v42 = vld [vmem:[#allocation31_spill] sm:$0xff] }
 0x249   : > { %4363 = vrcp.f32 %v2248_v14  ;;  %v4348_v34 = vpop.eup %4347  ;;  %v2250_v17 = vadd.f32 1.0, %v4346_v59  ;;  %v2450_v48 = vmul.f32 %v5403_v5, %v5790_v33  ;;  %v3754_v14 = vmul.f32 -1.442695, %v5792_v15  ;;  %v5793_v59 = vld [vmem:[#allocation29_spill] sm:$0xff]  ;;  %v5796_v33 = vld [vmem:[#allocation32_spill] sm:$0xff] }
 0x24a   : > { %4365 = vpow2.f32 %v3752_v12  ;;  %v4350_v50 = vpop.eup %4349  ;;  %v2251_v49 = vadd.f32 1.0, %v4348_v34  ;;  %v5486_v12 = vmul.f32 %v5418_v56, %v5226_v13  ;;  %v3755_v5 = vmul.f32 -1.442695, %v5793_v59  ;;  %v5794_v34 = vld [vmem:[#allocation30_spill] sm:$0xff] }
 0x24b   : > { %4367 = vrcp.f32 %v2249_v8  ;;  %v4352_v9 = vpop.eup %4351  ;;  %v2252_v18 = vadd.f32 1.0, %v4350_v50  ;;  %v3756_v20 = vmul.f32 -1.442695, %v5794_v34  ;;  %v3757_v13 = vmul.f32 -1.442695, %v5795_v42 }
 0x24c   : > { %4369 = vpow2.f32 %v3753_v6  ;;  %v1692_v23 = vpop.f32.mrb[64].mxu1  ;;  %v5489_v8 = vpop.eup %4353  ;;  %v2253_v52 = vadd.f32 1.0, %v4352_v9  ;;  %v3758_v51 = vmul.f32 -1.442695, %v5796_v33  ;;  %v2268_v34 = vadd.f32 1.0, %v5433_v7 }
 0x24d   : > { %4371 = vrcp.f32 %v2250_v17  ;;  %v5492_v36 = vmul.f32 %v2446_v1, %v1692_v23  ;;  %v1694_v6 = vpop.f32.mrb[65].mxu1  ;;  %v2267_v23 = vadd.f32 1.0, %v5428_v10 }
 0x24e   : > { %4373 = vrcp.f32 %v2251_v49  ;;  %v5496_v56 = vmul.f32 %v2447_v3, %v1694_v6  ;;  %v1696_v17 = vpop.f32.mrb[66].mxu1 }
 0x24f   : > { %v4356_v40 = vpop.eup %4355  ;;  %4375 = vrcp.f32 %v2252_v18  ;;  %v5500_v49 = vmul.f32 %v2448_v44, %v1696_v17  ;;  %v1698_v1 = vpop.f32.mrb[67].mxu1 }
 0x250   : > { %v4358_v50 = vpop.eup %4357  ;;  %v2438_v15 = vmul.f32 %v4356_v40, %v5316_v47  ;;  %4377 = vrcp.f32 %v2253_v52  ;;  %v5504_v42 = vmul.f32 %v2449_v63, %v1698_v1  ;;  %v5797_v40 = vld [vmem:[#allocation33_spill] sm:$0xff]  ;;  %v5798_v63 = vld [vmem:[#allocation34_spill] sm:$0xff]  ;;  %v5800_v1 = vld [vmem:[#allocation36_spill] sm:$0xff] }
 0x251   : > { %v4360_v9 = vpop.eup %4359  ;;  %4379 = vpow2.f32 %v3754_v14  ;;  %v2269_v52 = vadd.f32 1.0, %v4358_v50  ;;  %v3759_v17 = vmul.f32 -1.442695, %v5797_v40  ;;  %v3760_v14 = vmul.f32 -1.442695, %v5798_v63  ;;  %v5799_v50 = vld [vmem:[#allocation35_spill] sm:$0xff] }
 0x252   : > { %v4362_v3 = vpop.eup %4361  ;;  %4381 = vpow2.f32 %v3755_v5  ;;  %v2439_v18 = vmul.f32 %v4360_v9, %v5324_v61  ;;  %v2502_v6 = vmul.f32 %v2438_v15, %v5438_v11  ;;  %v2453_v15 = vmul.f32 %v5421_v31, %v5230_v16 }
 0x253   : > { %v4364_v44 = vpop.eup %4363  ;;  %4383 = vpow2.f32 %v3756_v20  ;;  %v3761_v20 = vmul.f32 -1.442695, %v5799_v50  ;;  %v5520_v9 = vmul.f32 -1.442695, %v5800_v1 }
 0x254   : > { %v4366_v7 = vpop.eup %4365  ;;  %4385 = vpow2.f32 %v3757_v13  ;;  %v2440_v5 = vmul.f32 %v4364_v44, %v5331_v38  ;;  %v2503_v61 = vmul.f32 %v2439_v18, %v5441_v45  ;;  %v1702_v47 = vpop.f32.mrb[68].mxu1  ;;  %v2270_v44 = vadd.f32 1.0, %v4362_v3 }
 0x255   : > { %v4368_v11 = vpop.eup %4367  ;;  %4387 = vrcp.f32 %v2267_v23  ;;  %v5524_v38 = vmul.f32 %v2450_v48, %v1702_v47  ;;  %v1704_v45 = vpop.f32.mrb[69].mxu1  ;;  %v2271_v16 = vadd.f32 1.0, %v4366_v7 }
 0x256   : > { %v4370_v10 = vpop.eup %4369  ;;  %4389 = vrcp.f32 %v2268_v34  ;;  %v2441_v13 = vmul.f32 %v4368_v11, %v5777_v25  ;;  %v2504_v63 = vmul.f32 %v2440_v5, %v5447_v43  ;;  %v5527_v31 = vmul.f32 %v5482_v55, %v1704_v45  ;;  %v1706_v23 = vpop.f32.mrb[70].mxu1 }
 0x257   : > { %v4372_v18 = vpop.eup %4371  ;;  %4391 = vrcp.f32 %v2269_v52  ;;  %v5532_v25 = vmul.f32 %v5486_v12, %v1706_v23  ;;  %v1708_v43 = vpop.f32.mrb[71].mxu1  ;;  %v2272_v47 = vadd.f32 1.0, %v4370_v10 }
 0x258   : > { %v4374_v1 = vpop.eup %4373  ;;  %v2442_v50 = vmul.f32 %v4372_v18, %v5778_v58  ;;  %v2554_v40 = vpack.c.bf16 %v2504_v63, %v2502_v6  ;;  %v2505_v34 = vmul.f32 %v2441_v13, %v5449_v54  ;;  %4393 = vpow2.f32 %v3758_v51 }
 0x259   : > { %v4376_v48 = vpop.eup %4375  ;;  %v2443_v3 = vmul.f32 %v4374_v1, %v5779_v4  ;;  %v5535_v52 = vmul.f32 %v2453_v15, %v1708_v43  ;;  %v2560_v54 = vpack.c.bf16 %v5532_v25, %v5524_v38  ;;  %4395 = vrcp.f32 %v2270_v44  ;;  %v5801_v44 = vld [vmem:[#allocation38_spill] sm:$0xff] }
 0x25a   : > { %v4378_v55 = vpop.eup %4377  ;;  %v2444_v7 = vmul.f32 %v4376_v48, %v5780_v53  ;;  %v2555_v5 = vpack.c.bf16 %v2505_v34, %v2503_v61  ;;  %v2506_v58 = vmul.f32 %v2442_v50, %v5458_v37  ;;  %v2454_v63 = vmul.f32 %v5443_v35, %v5234_v19  ;;  %v5802_v34 = vld [vmem:[#allocation40_spill] sm:$0xff] }
 0x25b   : > { %v4380_v6 = vpop.eup %4379  ;;  %v2445_v12 = vmul.f32 %v4378_v55, %v5781_v28  ;;  %v2507_v10 = vmul.f32 %v2443_v3, %v5461_v41  ;;  %v2561_v4 = vpack.c.bf16 %v5535_v52, %v5527_v31  ;;  %v2455_v53 = vmul.f32 %v5451_v62, %v5238_v21 }
 0x25c   : > { %v4382_v51 = vpop.eup %4381  ;;  %4397 = vrcp.f32 %v2271_v16  ;;  %2922 = vmatprep.mubr.bf16.mxu0 %v2555_v5  ;;  %v2508_v37 = vmul.f32 %v2444_v7, %v5463_v60  ;;  %v2456_v28 = vmul.f32 %v5455_v32, %v5240_v22  ;;  %v2457_v41 = vmul.f32 %v5468_v57, %v5244_v24  ;;  %v1712_v15 = vpop.f32.mrb[72].mxu1  ;;  %v5804_v7 = vld [vmem:[#allocation44_spill] sm:$0xff] }
 0x25d   : > { %v4384_v61 = vpop.eup %4383  ;;  %4399 = vrcp.f32 %v2272_v47  ;;  %2923 = vmatmul.mubr.bf16.gmra.mrb[56].mxu0 %v2554_v40  ;;  %v2509_v11 = vmul.f32 %v2445_v12, %v5466_v39  ;;  %v2273_v35 = vadd.f32 1.0, %v4380_v6  ;;  %v5555_v62 = vmul.f32 %v2454_v63, %v1712_v15  ;;  %v1714_v50 = vpop.f32.mrb[73].mxu1 }
 0x25e   : > { %v4386_v19 = vpop.eup %4385  ;;  %4401 = vpow2.f32 %v3759_v17  ;;  %v2556_v21 = vpack.c.bf16 %v2508_v37, %v2506_v58  ;;  %v2274_v1 = vadd.f32 1.0, %v4382_v51  ;;  %v5557_v22 = vmul.f32 %v2455_v53, %v1714_v50  ;;  %v1716_v32 = vpop.f32.mrb[74].mxu1 }
 0x25f   : > { %v4388_v60 = vpop.eup %4387  ;;  %4403 = vpow2.f32 %v3760_v14  ;;  %v2557_v13 = vpack.c.bf16 %v2509_v11, %v2507_v10  ;;  %v2275_v57 = vadd.f32 1.0, %v4384_v61  ;;  %v5559_v40 = vmul.f32 %v2456_v28, %v1716_v32  ;;  %v1718_v39 = vpop.f32.mrb[75].mxu1 }
 0x260   : > { %v4390_v24 = vpop.eup %4389  ;;  %4405 = vpow2.f32 %v3761_v20  ;;  %v2276_v18 = vadd.f32 1.0, %v4386_v19  ;;  %v5562_v17 = vmul.f32 %v2457_v41, %v1718_v39  ;;  %v3763_v14 = vmul.f32 -1.442695, %v5801_v44 }
 0x261   : > { %v4392_v45 = vpop.eup %4391  ;;  %4407 = vpow2.f32 %v5520_v9  ;;  %2932 = vmatprep.mubr.bf16.mxu0 %v2557_v13  ;;  %v2562_v16 = vpack.c.bf16 %v5559_v40, %v5555_v62  ;;  %v3764_v20 = vmul.f32 -1.442695, %v5802_v34  ;;  %v2458_v48 = vmul.f32 %v5489_v8, %v5250_v27  ;;  %v5803_v9 = vld [vmem:[#allocation42_spill] sm:$0xff] }
 0x262   : > { %4409 = vrcp.f32 %v2273_v35  ;;  %v4394_v23 = vpop.eup %4393  ;;  %v2563_v43 = vpack.c.bf16 %v5562_v17, %v5557_v22  ;;  %v3765_v47 = vmul.f32 -1.442695, %v5803_v9  ;;  %v2459_v55 = vmul.f32 %v4388_v60, %v5254_v29  ;;  %v5810_v17 = vld [vmem:[#allocation33_spill] sm:$0xff] }
 0x263   : > { %4411 = vrcp.f32 %v2274_v1  ;;  %v4396_v3 = vpop.eup %4395  ;;  %v3766_v5 = vmul.f32 -1.442695, %v5804_v7  ;;  %v2460_v12 = vmul.f32 %v4390_v24, %v5256_v30  ;;  %v2277_v10 = vadd.f32 1.0, %v4394_v23  ;;  %v5807_v23 = vld [vmem:[#allocation28_spill] sm:$0xff] }
 0x264   : > { %4413 = vrcp.f32 %v2275_v57  ;;  %v1722_v58 = vpop.f32.mrb[76].mxu1  ;;  %v5805_v51 = vpack.c.bf16 %v5504_v42, %v5496_v56  ;;  %v2461_v29 = vmul.f32 %v4392_v45, %v5782_v0  ;;  %v5806_v32 = vpack.c.bf16 %v5500_v49, %v5492_v36 }
 0x265   : > { %4415 = vrcp.f32 %v2276_v18  ;;  %2933 = vmatmul.mubr.bf16.gmra.mrb[60].mxu0 %v2556_v21  ;;  %v5579_v27 = vmul.f32 %v2458_v48, %v1722_v58  ;;  %v1724_v8 = vpop.f32.mrb[77].mxu1  ;;  %v2462_v21 = vmul.f32 %v4396_v3, %v5783_v2 }
 0x266   : > { %v4398_v6 = vpop.eup %4397  ;;  %4417 = vpow2.f32 %v3763_v14  ;;  %2942 = vmatprep.mubr.bf16.mxu0 %v5805_v51  ;;  %v5582_v53 = vmul.f32 %v2459_v55, %v1724_v8  ;;  %v1726_v37 = vpop.f32.mrb[78].mxu1 }
 0x267   : > { %v4400_v63 = vpop.eup %4399  ;;  %4419 = vpow2.f32 %v3764_v20  ;;  %v5584_v28 = vmul.f32 %v2460_v12, %v1726_v37  ;;  %v1728_v30 = vpop.f32.mrb[79].mxu1  ;;  %v2463_v1 = vmul.f32 %v4398_v6, %v5784_v26 }
 0x268   : > { %v4402_v61 = vpop.eup %4401  ;;  %4421 = vpow2.f32 %v3765_v47  ;;  %v5586_v11 = vmul.f32 %v2461_v29, %v1728_v30  ;;  %v2464_v39 = vmul.f32 %v4400_v63, %v5785_v46  ;;  %v5809_v29 = vld [vmem:[#allocation31_spill] sm:$0xff] }
 0x269   : > { %v4404_v41 = vpop.eup %4403  ;;  %4423 = vpow2.f32 %v3766_v5  ;;  %v2564_v56 = vpack.c.bf16 %v5584_v28, %v5579_v27  ;;  %v2278_v0 = vadd.f32 1.0, %v4402_v61  ;;  %v2576_v27 = vld [vmem:[#allocation4 + $0x10] sm:$0xff] }
 0x26a   : > { %v4406_v42 = vpop.eup %4405  ;;  %4425 = vrcp.f32 %v2277_v10  ;;  %v2565_v19 = vpack.c.bf16 %v5586_v11, %v5582_v53  ;;  %v2279_v50 = vadd.f32 1.0, %v4404_v41  ;;  %v5808_v10 = vld [vmem:[#allocation30_spill] sm:$0xff] }
 0x26b   : > { %v4408_v15 = vpop.eup %4407  ;;  %v2280_v13 = vadd.f32 1.0, %v4406_v42  ;;  %4427 = vrcp.f32 %v2278_v0 }
 0x26c   : > { %v4410_v35 = vpop.eup %4409  ;;  %v1732_v24 = vpop.f32.mrb[80].mxu1  ;;  %v2281_v45 = vadd.f32 1.0, %v4408_v15  ;;  %4429 = vrcp.f32 %v2279_v50 }
 0x26d   : > { %v4412_v60 = vpop.eup %4411  ;;  %2943 = vmatmul.mubr.bf16.gmra.mrb[64].mxu0 %v5806_v32  ;;  %v5601_v18 = vmul.f32 %v2462_v21, %v1732_v24  ;;  %v1734_v2 = vpop.f32.mrb[81].mxu1  ;;  %v2465_v26 = vmul.f32 %v4410_v35, %v5807_v23  ;;  %4431 = vrcp.f32 %v2280_v13  ;;  %v5812_v32 = vld [vmem:[#allocation35_spill] sm:$0xff] }
 0x26e   : > { %v4414_v57 = vpop.eup %4413  ;;  %2952 = vmatprep.mubr.bf16.mxu0 %v2561_v4  ;;  %v5604_v20 = vmul.f32 %v2463_v1, %v1734_v2  ;;  %v1736_v36 = vpop.f32.mrb[82].mxu1  ;;  %4433 = vrcp.f32 %v2281_v45  ;;  %v2466_v6 = vmul.f32 %v4412_v60, %v5793_v59  ;;  %v5811_v1 = vld [vmem:[#allocation34_spill] sm:$0xff]  ;;  %v5813_v45 = vld [vmem:[#allocation36_spill] sm:$0xff] }
 0x26f   : > { %v4416_v14 = vpop.eup %4415  ;;  %v5606_v48 = vmul.f32 %v2464_v39, %v1736_v36  ;;  %v1738_v46 = vpop.f32.mrb[83].mxu1  ;;  %v2467_v51 = vmul.f32 %v4414_v57, %v5808_v10 }
 0x270   : > { %v4418_v49 = vpop.eup %4417  ;;  %v2529_v3 = vmul.f32 %v2465_v26, %v1738_v46  ;;  %v2468_v37 = vmul.f32 %v4416_v14, %v5809_v29 }
 0x271   : > { %v4420_v47 = vpop.eup %4419  ;;  %v2566_v52 = vpack.c.bf16 %v5606_v48, %v5601_v18  ;;  %v2282_v55 = vadd.f32 1.0, %v4418_v49  ;;  %v2578_v48 = vld [vmem:[#allocation4 + $0x20] sm:$0xff] }
 0x272   : > { %v4422_v31 = vpop.eup %4421  ;;  %v2567_v5 = vpack.c.bf16 %v2529_v3, %v5604_v20  ;;  %v2283_v12 = vadd.f32 1.0, %v4420_v47 }
 0x273   : > { %v4424_v4 = vpop.eup %4423  ;;  %v2284_v8 = vadd.f32 1.0, %v4422_v31  ;;  %4435 = vrcp.f32 %v2282_v55 }
 0x274   : > { %v4426_v58 = vpop.eup %4425  ;;  %v1742_v63 = vpop.f32.mrb[84].mxu1  ;;  %v2285_v61 = vadd.f32 1.0, %v4424_v4  ;;  %4437 = vrcp.f32 %v2283_v12 }
 0x275   : > { %2953 = vmatmul.mubr.bf16.gmra.mrb[68].mxu0 %v2560_v54  ;;  %v2530_v30 = vmul.f32 %v2466_v6, %v1742_v63  ;;  %v1744_v41 = vpop.f32.mrb[85].mxu1  ;;  %v2469_v59 = vmul.f32 %v4426_v58, %v5796_v33  ;;  %v4428_v38 = vpop.eup %4427  ;;  %4439 = vrcp.f32 %v2284_v8 }
 0x276   : > { %2962 = vmatprep.mubr.bf16.mxu0 %v2563_v43  ;;  %v2531_v42 = vmul.f32 %v2467_v51, %v1744_v41  ;;  %v1746_v15 = vpop.f32.mrb[86].mxu1  ;;  %v4430_v54 = vpop.eup %4429  ;;  %4441 = vrcp.f32 %v2285_v61  ;;  %v2470_v43 = vmul.f32 %v4428_v38, %v5810_v17  ;;  %v2580_v41 = vld [vmem:[#allocation4 + $0x30] sm:$0xff] }
 0x277   : > { %v2532_v0 = vmul.f32 %v2468_v37, %v1746_v15  ;;  %v1748_v35 = vpop.f32.mrb[87].mxu1  ;;  %v4432_v50 = vpop.eup %4431  ;;  %v2471_v13 = vmul.f32 %v4430_v54, %v5811_v1  ;;  %v2581_v15 = vld [vmem:[#allocation4 + $0x38] sm:$0xff] }
 0x278   : > { %v2533_v25 = vmul.f32 %v2469_v59, %v1748_v35  ;;  %v4434_v22 = vpop.eup %4433  ;;  %v2472_v24 = vmul.f32 %v4432_v50, %v5812_v32  ;;  %v2583_v50 = vld [vmem:[#allocation4 + $0x48] sm:$0xff]  ;;  %v2585_v1 = vld [vmem:[#allocation4 + $0x58] sm:$0xff] }
 0x279   : > { %v2568_v21 = vpack.c.bf16 %v2532_v0, %v2530_v30  ;;  %v2473_v2 = vmul.f32 %v4434_v22, %v5813_v45  ;;  %v2584_v22 = vld [vmem:[#allocation4 + $0x50] sm:$0xff]  ;;  %v2587_v45 = vld [vmem:[#allocation4 + $0x68] sm:$0xff] }
 0x27a   : > { %v2569_v60 = vpack.c.bf16 %v2533_v25, %v2531_v42 }
 0x27c   : > { %v1752_v33 = vpop.f32.mrb[88].mxu1 }
 0x27d   : > { %2963 = vmatmul.mubr.bf16.gmra.mrb[72].mxu0 %v2562_v16  ;;  %v2534_v57 = vmul.f32 %v2470_v43, %v1752_v33  ;;  %v1754_v39 = vpop.f32.mrb[89].mxu1  ;;  %v4436_v36 = vpop.eup %4435 }
 0x27e   : > { %2972 = vmatprep.mubr.bf16.mxu0 %v2565_v19  ;;  %v2535_v14 = vmul.f32 %v2471_v13, %v1754_v39  ;;  %v1756_v23 = vpop.f32.mrb[90].mxu1  ;;  %v4438_v46 = vpop.eup %4437  ;;  %v2474_v3 = vmul.f32 %v4436_v36, %v5801_v44  ;;  %v2586_v39 = vld [vmem:[#allocation4 + $0x60] sm:$0xff] }
 0x27f   : > { %v2536_v26 = vmul.f32 %v2472_v24, %v1756_v23  ;;  %v1758_v20 = vpop.f32.mrb[91].mxu1  ;;  %v4440_v40 = vpop.eup %4439  ;;  %v2475_v53 = vmul.f32 %v4438_v46, %v5802_v34  ;;  %v2574_v34 = vld [vmem:[#allocation4] sm:$0xff] }
 0x280   : > { %v2537_v49 = vmul.f32 %v2473_v2, %v1758_v20  ;;  %v4442_v47 = vpop.eup %4441  ;;  %v2476_v19 = vmul.f32 %v4440_v40, %v5803_v9  ;;  %v2575_v9 = vld [vmem:[#allocation4 + $0x8] sm:$0xff]  ;;  %v2589_v20 = vld [vmem:[#allocation4 + $0x78] sm:$0xff] }
 0x281   : > { %v2570_v62 = vpack.c.bf16 %v2536_v26, %v2534_v57  ;;  %v2477_v55 = vmul.f32 %v4442_v47, %v5804_v7  ;;  %v2591_v47 = vld [vmem:[#allocation4 + $0x88] sm:$0xff] }
 0x282   : > { %v2571_v16 = vpack.c.bf16 %v2537_v49, %v2535_v14  ;;  %v2588_v14 = vld [vmem:[#allocation4 + $0x70] sm:$0xff] }
 0x284   : > { %v1762_v11 = vpop.f32.mrb[92].mxu1 }
 0x285   : > { %2973 = vmatmul.mubr.bf16.gmra.mrb[76].mxu0 %v2564_v56  ;;  %v2538_v31 = vmul.f32 %v2474_v3, %v1762_v11  ;;  %v1764_v4 = vpop.f32.mrb[93].mxu1 }
 0x286   : > { %2982 = vmatprep.mubr.bf16.mxu0 %v2567_v5  ;;  %v2539_v58 = vmul.f32 %v2475_v53, %v1764_v4  ;;  %v1766_v6 = vpop.f32.mrb[94].mxu1  ;;  %v2577_v5 = vld [vmem:[#allocation4 + $0x18] sm:$0xff]  ;;  %v2592_v53 = vld [vmem:[#allocation4 + $0x90] sm:$0xff] }
 0x287   : > { %v2540_v12 = vmul.f32 %v2476_v19, %v1766_v6  ;;  %v1768_v10 = vpop.f32.mrb[95].mxu1 }
 0x288   : > { %v2541_v51 = vmul.f32 %v2477_v55, %v1768_v10  ;;  %v2594_v10 = vld [vmem:[#allocation4 + $0xa0] sm:$0xff] }
 0x289   : > { %v2572_v44 = vpack.c.bf16 %v2540_v12, %v2538_v31  ;;  %v2593_v31 = vld [vmem:[#allocation4 + $0x98] sm:$0xff] }
 0x28a   : > { %v2573_v8 = vpack.c.bf16 %v2541_v51, %v2539_v58  ;;  %v2595_v51 = vld [vmem:[#allocation4 + $0xa8] sm:$0xff] }
 0x28d   : > { %2983 = vmatmul.mubr.bf16.gmra.mrb[80].mxu0 %v2566_v52  ;;  %v2579_v52 = vld [vmem:[#allocation4 + $0x28] sm:$0xff] }
 0x28e   : > { %2992 = vmatprep.mubr.bf16.mxu0 %v2569_v60 }
 0x295   : > { %2993 = vmatmul.mubr.bf16.gmra.mrb[84].mxu0 %v2568_v21  ;;  %v2582_v21 = vld [vmem:[#allocation4 + $0x40] sm:$0xff] }
 0x296   : > { %3002 = vmatprep.mubr.bf16.mxu0 %v2571_v16  ;;  %v2590_v16 = vld [vmem:[#allocation4 + $0x80] sm:$0xff] }
 0x29d   : > { %3003 = vmatmul.mubr.bf16.gmra.mrb[88].mxu0 %v2570_v62 }
 0x29e   : > { %3012 = vmatprep.mubr.bf16.mxu0 %v2573_v8  ;;  %v2596_v8 = vld [vmem:[#allocation4 + $0xb0] sm:$0xff] }
 0x2a5   : > { %3013 = vmatmul.mubr.bf16.gmra.mrb[92].mxu0 %v2572_v44 }
 0x2e8   : > { %v2864_v7 = vpop.f32.mrb[32].mxu0 }
 0x2e9   : > { %v3023_v28 = vadd.f32 %v2864_v7, %v2574_v34  ;;  %v2866_v56 = vpop.f32.mrb[33].mxu0  ;;  %v2597_v7 = vld [vmem:[#allocation4 + $0xb8] sm:$0xff] }
 0x2ea   : > { %v3024_v63 = vadd.f32 %v2866_v56, %v2575_v9  ;;  %v2868_v29 = vpop.f32.mrb[34].mxu0 }
 0x2eb   : > { %3087 = vst [vmem:[#allocation4] sm:$0xff] %v3023_v28  ;;  %v3025_v37 = vadd.f32 %v2868_v29, %v2576_v27  ;;  %v2870_v61 = vpop.f32.mrb[35].mxu0  ;;  %v2598_v29 = vld [vmem:[#allocation4 + $0xc0] sm:$0xff] }
 0x2ec   : > { %3088 = vst [vmem:[#allocation4 + $0x8] sm:$0xff] %v3024_v63  ;;  %v3026_v18 = vadd.f32 %v2870_v61, %v2577_v5 }
 0x2ed   : > { %3089 = vst [vmem:[#allocation4 + $0x10] sm:$0xff] %v3025_v37  ;;  %v2599_v37 = vld [vmem:[#allocation4 + $0xc8] sm:$0xff] }
 0x2ee   : > { %3090 = vst [vmem:[#allocation4 + $0x18] sm:$0xff] %v3026_v18  ;;  %v2600_v18 = vld [vmem:[#allocation4 + $0xd0] sm:$0xff] }
 0x2f0   : > { %v2874_v30 = vpop.f32.mrb[36].mxu0 }
 0x2f1   : > { %v3027_v59 = vadd.f32 %v2874_v30, %v2578_v48  ;;  %v2876_v42 = vpop.f32.mrb[37].mxu0  ;;  %v2601_v30 = vld [vmem:[#allocation4 + $0xd8] sm:$0xff] }
 0x2f2   : > { %v3028_v0 = vadd.f32 %v2876_v42, %v2579_v52  ;;  %v2878_v35 = vpop.f32.mrb[38].mxu0 }
 0x2f3   : > { %3091 = vst [vmem:[#allocation4 + $0x20] sm:$0xff] %v3027_v59  ;;  %v3029_v38 = vadd.f32 %v2878_v35, %v2580_v41  ;;  %v2880_v25 = vpop.f32.mrb[39].mxu0  ;;  %v2602_v35 = vld [vmem:[#allocation4 + $0xe0] sm:$0xff] }
 0x2f4   : > { %3092 = vst [vmem:[#allocation4 + $0x28] sm:$0xff] %v3028_v0  ;;  %v3030_v54 = vadd.f32 %v2880_v25, %v2581_v15 }
 0x2f5   : > { %3093 = vst [vmem:[#allocation4 + $0x30] sm:$0xff] %v3029_v38  ;;  %v2603_v38 = vld [vmem:[#allocation4 + $0xe8] sm:$0xff] }
 0x2f6   : > { %3094 = vst [vmem:[#allocation4 + $0x38] sm:$0xff] %v3030_v54  ;;  %v2604_v54 = vld [vmem:[#allocation4 + $0xf0] sm:$0xff] }
 0x2f8   : > { %v2884_v60 = vpop.f32.mrb[40].mxu0 }
 0x2f9   : > { %v3031_v17 = vadd.f32 %v2884_v60, %v2582_v21  ;;  %v2886_v43 = vpop.f32.mrb[41].mxu0  ;;  %v2605_v60 = vld [vmem:[#allocation4 + $0xf8] sm:$0xff] }
 0x2fa   : > { %v3032_v13 = vadd.f32 %v2886_v43, %v2583_v50  ;;  %v2888_v33 = vpop.f32.mrb[42].mxu0 }
 0x2fb   : > { %3095 = vst [vmem:[#allocation4 + $0x40] sm:$0xff] %v3031_v17  ;;  %v3033_v32 = vadd.f32 %v2888_v33, %v2584_v22  ;;  %v2890_v24 = vpop.f32.mrb[43].mxu0  ;;  %v2606_v33 = vld [vmem:[#allocation4 + $0x100] sm:$0xff] }
 0x2fc   : > { %3096 = vst [vmem:[#allocation4 + $0x48] sm:$0xff] %v3032_v13  ;;  %v3034_v57 = vadd.f32 %v2890_v24, %v2585_v1 }
 0x2fd   : > { %3097 = vst [vmem:[#allocation4 + $0x50] sm:$0xff] %v3033_v32  ;;  %v2607_v32 = vld [vmem:[#allocation4 + $0x108] sm:$0xff] }
 0x2fe   : > { %3098 = vst [vmem:[#allocation4 + $0x58] sm:$0xff] %v3034_v57  ;;  %v2608_v57 = vld [vmem:[#allocation4 + $0x110] sm:$0xff] }
 0x300   : > { %v2894_v2 = vpop.f32.mrb[44].mxu0 }
 0x301   : > { %v3035_v23 = vadd.f32 %v2894_v2, %v2586_v39  ;;  %v2896_v26 = vpop.f32.mrb[45].mxu0  ;;  %v2609_v2 = vld [vmem:[#allocation4 + $0x118] sm:$0xff] }
 0x302   : > { %v3036_v36 = vadd.f32 %v2896_v26, %v2587_v45  ;;  %v2898_v49 = vpop.f32.mrb[46].mxu0 }
 0x303   : > { %3099 = vst [vmem:[#allocation4 + $0x60] sm:$0xff] %v3035_v23  ;;  %v3037_v46 = vadd.f32 %v2898_v49, %v2588_v14  ;;  %v2900_v62 = vpop.f32.mrb[47].mxu0  ;;  %v2610_v49 = vld [vmem:[#allocation4 + $0x120] sm:$0xff] }
 0x304   : > { %3100 = vst [vmem:[#allocation4 + $0x68] sm:$0xff] %v3036_v36  ;;  %v3038_v40 = vadd.f32 %v2900_v62, %v2589_v20 }
 0x305   : > { %3101 = vst [vmem:[#allocation4 + $0x70] sm:$0xff] %v3037_v46  ;;  %v2611_v46 = vld [vmem:[#allocation4 + $0x128] sm:$0xff] }
 0x306   : > { %3102 = vst [vmem:[#allocation4 + $0x78] sm:$0xff] %v3038_v40  ;;  %v2612_v40 = vld [vmem:[#allocation4 + $0x130] sm:$0xff] }
 0x313   : > { %v2904_v3 = vpop.f32.mrb[48].mxu0 }
 0x314   : > { %v3039_v11 = vadd.f32 %v2904_v3, %v2590_v16  ;;  %v2906_v19 = vpop.f32.mrb[49].mxu0  ;;  %v2613_v3 = vld [vmem:[#allocation4 + $0x138] sm:$0xff] }
 0x315   : > { %v3040_v4 = vadd.f32 %v2906_v19, %v2591_v47  ;;  %v2908_v55 = vpop.f32.mrb[50].mxu0 }
 0x316   : > { %3103 = vst [vmem:[#allocation4 + $0x80] sm:$0xff] %v3039_v11  ;;  %v3041_v58 = vadd.f32 %v2908_v55, %v2592_v53  ;;  %v2910_v6 = vpop.f32.mrb[51].mxu0  ;;  %v2614_v55 = vld [vmem:[#allocation4 + $0x140] sm:$0xff] }
 0x317   : > { %3104 = vst [vmem:[#allocation4 + $0x88] sm:$0xff] %v3040_v4  ;;  %v3042_v12 = vadd.f32 %v2910_v6, %v2593_v31 }
 0x318   : > { %3105 = vst [vmem:[#allocation4 + $0x90] sm:$0xff] %v3041_v58  ;;  %v2615_v58 = vld [vmem:[#allocation4 + $0x148] sm:$0xff] }
 0x319   : > { %3106 = vst [vmem:[#allocation4 + $0x98] sm:$0xff] %v3042_v12  ;;  %v2616_v12 = vld [vmem:[#allocation4 + $0x150] sm:$0xff] }
 0x31b   : > { %v2914_v44 = vpop.f32.mrb[52].mxu0 }
 0x31c   : > { %v3043_v34 = vadd.f32 %v2914_v44, %v2594_v10  ;;  %v2916_v9 = vpop.f32.mrb[53].mxu0  ;;  %v2617_v44 = vld [vmem:[#allocation4 + $0x158] sm:$0xff] }
 0x31d   : > { %v3044_v27 = vadd.f32 %v2916_v9, %v2595_v51  ;;  %v2918_v28 = vpop.f32.mrb[54].mxu0 }
 0x31e   : > { %3107 = vst [vmem:[#allocation4 + $0xa0] sm:$0xff] %v3043_v34  ;;  %v3045_v56 = vadd.f32 %v2918_v28, %v2596_v8  ;;  %v2920_v5 = vpop.f32.mrb[55].mxu0  ;;  %v2618_v28 = vld [vmem:[#allocation4 + $0x160] sm:$0xff] }
 0x31f   : > { %3108 = vst [vmem:[#allocation4 + $0xa8] sm:$0xff] %v3044_v27  ;;  %v3046_v63 = vadd.f32 %v2920_v5, %v2597_v7 }
 0x320   : > { %3109 = vst [vmem:[#allocation4 + $0xb0] sm:$0xff] %v3045_v56  ;;  %v2619_v56 = vld [vmem:[#allocation4 + $0x168] sm:$0xff] }
 0x321   : > { %3110 = vst [vmem:[#allocation4 + $0xb8] sm:$0xff] %v3046_v63  ;;  %v2620_v63 = vld [vmem:[#allocation4 + $0x170] sm:$0xff] }
 0x330   : > { %v2924_v61 = vpop.f32.mrb[56].mxu0 }
 0x331   : > { %v3047_v48 = vadd.f32 %v2924_v61, %v2598_v29  ;;  %v2926_v52 = vpop.f32.mrb[57].mxu0  ;;  %v2621_v61 = vld [vmem:[#allocation4 + $0x178] sm:$0xff] }
 0x332   : > { %v3048_v41 = vadd.f32 %v2926_v52, %v2599_v37  ;;  %v2928_v59 = vpop.f32.mrb[58].mxu0 }
 0x333   : > { %3111 = vst [vmem:[#allocation4 + $0xc0] sm:$0xff] %v3047_v48  ;;  %v3049_v42 = vadd.f32 %v2928_v59, %v2600_v18  ;;  %v2930_v15 = vpop.f32.mrb[59].mxu0  ;;  %v2622_v59 = vld [vmem:[#allocation4 + $0x180] sm:$0xff] }
 0x334   : > { %3112 = vst [vmem:[#allocation4 + $0xc8] sm:$0xff] %v3048_v41  ;;  %v3050_v0 = vadd.f32 %v2930_v15, %v2601_v30 }
 0x335   : > { %3113 = vst [vmem:[#allocation4 + $0xd0] sm:$0xff] %v3049_v42  ;;  %v2623_v42 = vld [vmem:[#allocation4 + $0x188] sm:$0xff] }
 0x336   : > { %3114 = vst [vmem:[#allocation4 + $0xd8] sm:$0xff] %v3050_v0  ;;  %v2624_v0 = vld [vmem:[#allocation4 + $0x190] sm:$0xff] }
 0x338   : > { %v2934_v25 = vpop.f32.mrb[60].mxu0 }
 0x339   : > { %v3051_v21 = vadd.f32 %v2934_v25, %v2602_v35  ;;  %v2936_v50 = vpop.f32.mrb[61].mxu0  ;;  %v2625_v25 = vld [vmem:[#allocation4 + $0x198] sm:$0xff] }
 0x33a   : > { %v3052_v22 = vadd.f32 %v2936_v50, %v2603_v38  ;;  %v2938_v17 = vpop.f32.mrb[62].mxu0 }
 0x33b   : > { %3115 = vst [vmem:[#allocation4 + $0xe0] sm:$0xff] %v3051_v21  ;;  %v3053_v43 = vadd.f32 %v2938_v17, %v2604_v54  ;;  %v2940_v1 = vpop.f32.mrb[63].mxu0  ;;  %v2626_v17 = vld [vmem:[#allocation4 + $0x1a0] sm:$0xff] }
 0x33c   : > { %3116 = vst [vmem:[#allocation4 + $0xe8] sm:$0xff] %v3052_v22  ;;  %v3054_v13 = vadd.f32 %v2940_v1, %v2605_v60 }
 0x33d   : > { %3117 = vst [vmem:[#allocation4 + $0xf0] sm:$0xff] %v3053_v43  ;;  %v2627_v43 = vld [vmem:[#allocation4 + $0x1a8] sm:$0xff] }
 0x33e   : > { %3118 = vst [vmem:[#allocation4 + $0xf8] sm:$0xff] %v3054_v13  ;;  %v2628_v13 = vld [vmem:[#allocation4 + $0x1b0] sm:$0xff] }
 0x340   : > { %v2944_v24 = vpop.f32.mrb[64].mxu0 }
 0x341   : > { %v3055_v39 = vadd.f32 %v2944_v24, %v2606_v33  ;;  %v2946_v45 = vpop.f32.mrb[65].mxu0  ;;  %v2629_v24 = vld [vmem:[#allocation4 + $0x1b8] sm:$0xff] }
 0x342   : > { %v3056_v14 = vadd.f32 %v2946_v45, %v2607_v32  ;;  %v2948_v23 = vpop.f32.mrb[66].mxu0 }
 0x343   : > { %3119 = vst [vmem:[#allocation4 + $0x100] sm:$0xff] %v3055_v39  ;;  %v3057_v26 = vadd.f32 %v2948_v23, %v2608_v57  ;;  %v2950_v20 = vpop.f32.mrb[67].mxu0  ;;  %v2630_v23 = vld [vmem:[#allocation4 + $0x1c0] sm:$0xff] }
 0x344   : > { %3120 = vst [vmem:[#allocation4 + $0x108] sm:$0xff] %v3056_v14  ;;  %v3058_v36 = vadd.f32 %v2950_v20, %v2609_v2 }
 0x345   : > { %3121 = vst [vmem:[#allocation4 + $0x110] sm:$0xff] %v3057_v26  ;;  %v2631_v26 = vld [vmem:[#allocation4 + $0x1c8] sm:$0xff] }
 0x346   : > { %3122 = vst [vmem:[#allocation4 + $0x118] sm:$0xff] %v3058_v36  ;;  %v2632_v36 = vld [vmem:[#allocation4 + $0x1d0] sm:$0xff] }
 0x348   : > { %v2954_v62 = vpop.f32.mrb[68].mxu0 }
 0x349   : > { %v3059_v16 = vadd.f32 %v2954_v62, %v2610_v49  ;;  %v2956_v47 = vpop.f32.mrb[69].mxu0  ;;  %v2633_v62 = vld [vmem:[#allocation4 + $0x1d8] sm:$0xff] }
 0x34a   : > { %v3060_v53 = vadd.f32 %v2956_v47, %v2611_v46  ;;  %v2958_v11 = vpop.f32.mrb[70].mxu0 }
 0x34b   : > { %3123 = vst [vmem:[#allocation4 + $0x120] sm:$0xff] %v3059_v16  ;;  %v3061_v19 = vadd.f32 %v2958_v11, %v2612_v40  ;;  %v2960_v31 = vpop.f32.mrb[71].mxu0  ;;  %v2634_v11 = vld [vmem:[#allocation4 + $0x1e0] sm:$0xff] }
 0x34c   : > { %3124 = vst [vmem:[#allocation4 + $0x128] sm:$0xff] %v3060_v53  ;;  %v3062_v4 = vadd.f32 %v2960_v31, %v2613_v3 }
 0x34d   : > { %3125 = vst [vmem:[#allocation4 + $0x130] sm:$0xff] %v3061_v19  ;;  %v2635_v19 = vld [vmem:[#allocation4 + $0x1e8] sm:$0xff] }
 0x34e   : > { %3126 = vst [vmem:[#allocation4 + $0x138] sm:$0xff] %v3062_v4  ;;  %v2636_v4 = vld [vmem:[#allocation4 + $0x1f0] sm:$0xff] }
 0x350   : > { %v2964_v6 = vpop.f32.mrb[72].mxu0 }
 0x351   : > { %v3063_v10 = vadd.f32 %v2964_v6, %v2614_v55  ;;  %v2966_v51 = vpop.f32.mrb[73].mxu0  ;;  %v2637_v6 = vld [vmem:[#allocation4 + $0x1f8] sm:$0xff] }
 0x352   : > { %v3064_v8 = vadd.f32 %v2966_v51, %v2615_v58  ;;  %v2968_v34 = vpop.f32.mrb[74].mxu0 }
 0x353   : > { %3127 = vst [vmem:[#allocation4 + $0x140] sm:$0xff] %v3063_v10  ;;  %v3065_v9 = vadd.f32 %v2968_v34, %v2616_v12  ;;  %v2970_v7 = vpop.f32.mrb[75].mxu0  ;;  %v3156_v34 = vld [vmem:[#allocation4] sm:$0xff] (%p3151_p4) }
 0x354   : > { %3128 = vst [vmem:[#allocation4 + $0x148] sm:$0xff] %v3064_v8  ;;  %v3066_v27 = vadd.f32 %v2970_v7, %v2617_v44  ;;  %v3158_v7 = vld [vmem:[#allocation4 + $0x10] sm:$0xff] (%p3151_p4) }
 0x355   : > { %3129 = vst [vmem:[#allocation4 + $0x150] sm:$0xff] %v3065_v9  ;;  %v3157_v9 = vld [vmem:[#allocation4 + $0x8] sm:$0xff] (%p3151_p4) }
 0x356   : > { %3130 = vst [vmem:[#allocation4 + $0x158] sm:$0xff] %v3066_v27  ;;  %v3842_v27 = vpack.c.bf16 (%p3151_p4), %v3157_v9, %v3156_v34 }
 0x358   : > { %v2974_v5 = vpop.f32.mrb[76].mxu0  ;;  %3412 = vst [vmem:[#allocation13] sm:$0xff] (%p3151_p4), %v3842_v27 }
 0x359   : > { %v3067_v29 = vadd.f32 %v2974_v5, %v2618_v28  ;;  %v2976_v37 = vpop.f32.mrb[77].mxu0  ;;  %v3159_v28 = vld [vmem:[#allocation4 + $0x18] sm:$0xff] (%p3151_p4)  ;;  %v3161_v5 = vld [vmem:[#allocation4 + $0x28] sm:$0xff] (%p3151_p4) }
 0x35a   : > { %v3068_v18 = vadd.f32 %v2976_v37, %v2619_v56  ;;  %v2978_v48 = vpop.f32.mrb[78].mxu0  ;;  %v3160_v56 = vld [vmem:[#allocation4 + $0x20] sm:$0xff] (%p3151_p4)  ;;  %v3162_v37 = vld [vmem:[#allocation4 + $0x30] sm:$0xff] (%p3151_p4) }
 0x35b   : > { %3131 = vst [vmem:[#allocation4 + $0x160] sm:$0xff] %v3067_v29  ;;  %v3069_v52 = vadd.f32 %v2978_v48, %v2620_v63  ;;  %v2980_v30 = vpop.f32.mrb[79].mxu0  ;;  %v3843_v63 = vpack.c.bf16 (%p3151_p4), %v3159_v28, %v3158_v7  ;;  %v3844_v29 = vpack.c.bf16 (%p3151_p4), %v3161_v5, %v3160_v56 }
 0x35c   : > { %3132 = vst [vmem:[#allocation4 + $0x168] sm:$0xff] %v3068_v18  ;;  %v3070_v41 = vadd.f32 %v2980_v30, %v2621_v61  ;;  %v3163_v61 = vld [vmem:[#allocation4 + $0x38] sm:$0xff] (%p3151_p4)  ;;  %v3164_v18 = vld [vmem:[#allocation4 + $0x40] sm:$0xff] (%p3151_p4)  ;;  %v3166_v30 = vld [vmem:[#allocation4 + $0x50] sm:$0xff] (%p3151_p4) }
 0x35d   : > { %3133 = vst [vmem:[#allocation4 + $0x170] sm:$0xff] %v3069_v52  ;;  %v3845_v48 = vpack.c.bf16 (%p3151_p4), %v3163_v61, %v3162_v37  ;;  %v3165_v52 = vld [vmem:[#allocation4 + $0x48] sm:$0xff] (%p3151_p4)  ;;  %3413 = vst [vmem:[#allocation13 + $0x8] sm:$0xff] (%p3151_p4), %v3843_v63  ;;  %v3199_v34 = vld [vmem:[#allocation4 + $0x158] sm:$0xff] (%p3151_p4) }
 0x35e   : > { %3134 = vst [vmem:[#allocation4 + $0x178] sm:$0xff] %v3070_v41  ;;  %v3167_v41 = vld [vmem:[#allocation4 + $0x58] sm:$0xff] (%p3151_p4)  ;;  %3414 = vst [vmem:[#allocation13 + $0x10] sm:$0xff] (%p3151_p4), %v3844_v29 }
 0x35f   : > { %3415 = vst [vmem:[#allocation13 + $0x18] sm:$0xff] (%p3151_p4), %v3845_v48 }
 0x360   : > { %v2984_v15 = vpop.f32.mrb[80].mxu0 }
 0x361   : > { %v3071_v35 = vadd.f32 %v2984_v15, %v2622_v59  ;;  %v2986_v38 = vpop.f32.mrb[81].mxu0  ;;  %v3846_v59 = vpack.c.bf16 (%p3151_p4), %v3165_v52, %v3164_v18  ;;  %v3168_v15 = vld [vmem:[#allocation4 + $0x60] sm:$0xff] (%p3151_p4) }
 0x362   : > { %v3072_v54 = vadd.f32 %v2986_v38, %v2623_v42  ;;  %v2988_v21 = vpop.f32.mrb[82].mxu0  ;;  %v3847_v42 = vpack.c.bf16 (%p3151_p4), %v3167_v41, %v3166_v30  ;;  %v3200_v9 = vld [vmem:[#allocation4 + $0x160] sm:$0xff] (%p3151_p4) }
 0x363   : > { %3135 = vst [vmem:[#allocation4 + $0x180] sm:$0xff] %v3071_v35  ;;  %v3073_v50 = vadd.f32 %v2988_v21, %v2624_v0  ;;  %v2990_v60 = vpop.f32.mrb[83].mxu0  ;;  %v3169_v0 = vld [vmem:[#allocation4 + $0x68] sm:$0xff] (%p3151_p4)  ;;  %v3170_v35 = vld [vmem:[#allocation4 + $0x70] sm:$0xff] (%p3151_p4)  ;;  %3416 = vst [vmem:[#allocation13 + $0x20] sm:$0xff] (%p3151_p4), %v3846_v59 }
 0x364   : > { %3136 = vst [vmem:[#allocation4 + $0x188] sm:$0xff] %v3072_v54  ;;  %v3074_v22 = vadd.f32 %v2990_v60, %v2625_v25  ;;  %v3848_v38 = vpack.c.bf16 (%p3151_p4), %v3169_v0, %v3168_v15  ;;  %v3171_v25 = vld [vmem:[#allocation4 + $0x78] sm:$0xff] (%p3151_p4)  ;;  %v3172_v54 = vld [vmem:[#allocation4 + $0x80] sm:$0xff] (%p3151_p4)  ;;  %v3173_v21 = vld [vmem:[#allocation4 + $0x88] sm:$0xff] (%p3151_p4) }
 0x365   : > { %3137 = vst [vmem:[#allocation4 + $0x190] sm:$0xff] %v3073_v50  ;;  %3417 = vst [vmem:[#allocation13 + $0x28] sm:$0xff] (%p3151_p4), %v3847_v42  ;;  %v3849_v50 = vpack.c.bf16 (%p3151_p4), %v3171_v25, %v3170_v35  ;;  %v3850_v60 = vpack.c.bf16 (%p3151_p4), %v3173_v21, %v3172_v54  ;;  %v3201_v27 = vld [vmem:[#allocation4 + $0x168] sm:$0xff] (%p3151_p4)  ;;  %v3202_v28 = vld [vmem:[#allocation4 + $0x170] sm:$0xff] (%p3151_p4) }
 0x366   : > { %3138 = vst [vmem:[#allocation4 + $0x198] sm:$0xff] %v3074_v22  ;;  %v3174_v22 = vld [vmem:[#allocation4 + $0x90] sm:$0xff] (%p3151_p4)  ;;  %3418 = vst [vmem:[#allocation13 + $0x30] sm:$0xff] (%p3151_p4), %v3848_v38  ;;  %v3203_v56 = vld [vmem:[#allocation4 + $0x178] sm:$0xff] (%p3151_p4)  ;;  %v3864_v5 = vpack.c.bf16 (%p3151_p4), %v3201_v27, %v3200_v9 }
 0x367   : > { %3419 = vst [vmem:[#allocation13 + $0x38] sm:$0xff] (%p3151_p4), %v3849_v50  ;;  %3420 = vst [vmem:[#allocation13 + $0x40] sm:$0xff] (%p3151_p4), %v3850_v60  ;;  %v3865_v63 = vpack.c.bf16 (%p3151_p4), %v3203_v56, %v3202_v28 }
 0x368   : > { %v2994_v1 = vpop.f32.mrb[84].mxu0  ;;  %3434 = vst [vmem:[#allocation13 + $0xb0] sm:$0xff] (%p3151_p4), %v3864_v5 }
 0x369   : > { %v3075_v33 = vadd.f32 %v2994_v1, %v2626_v17  ;;  %v2996_v32 = vpop.f32.mrb[85].mxu0  ;;  %v3175_v17 = vld [vmem:[#allocation4 + $0x98] sm:$0xff] (%p3151_p4)  ;;  %3435 = vst [vmem:[#allocation13 + $0xb8] sm:$0xff] (%p3151_p4), %v3865_v63 }
 0x36a   : > { %v3076_v57 = vadd.f32 %v2996_v32, %v2627_v43  ;;  %v2998_v39 = vpop.f32.mrb[86].mxu0  ;;  %v3176_v43 = vld [vmem:[#allocation4 + $0xa0] sm:$0xff] (%p3151_p4)  ;;  %v3851_v1 = vpack.c.bf16 (%p3151_p4), %v3175_v17, %v3174_v22  ;;  %v3179_v32 = vld [vmem:[#allocation4 + $0xb8] sm:$0xff] (%p3151_p4) }
 0x36b   : > { %3139 = vst [vmem:[#allocation4 + $0x1a0] sm:$0xff] %v3075_v33  ;;  %v3077_v45 = vadd.f32 %v2998_v39, %v2628_v13  ;;  %v3000_v2 = vpop.f32.mrb[87].mxu0  ;;  %v3177_v13 = vld [vmem:[#allocation4 + $0xa8] sm:$0xff] (%p3151_p4)  ;;  %v3178_v33 = vld [vmem:[#allocation4 + $0xb0] sm:$0xff] (%p3151_p4)  ;;  %v3180_v39 = vld [vmem:[#allocation4 + $0xc0] sm:$0xff] (%p3151_p4) }
 0x36c   : > { %3140 = vst [vmem:[#allocation4 + $0x1a8] sm:$0xff] %v3076_v57  ;;  %v3078_v14 = vadd.f32 %v3000_v2, %v2629_v24  ;;  %v3852_v24 = vpack.c.bf16 (%p3151_p4), %v3177_v13, %v3176_v43  ;;  %v3853_v57 = vpack.c.bf16 (%p3151_p4), %v3179_v32, %v3178_v33  ;;  %v3182_v2 = vld [vmem:[#allocation4 + $0xd0] sm:$0xff] (%p3151_p4)  ;;  %3421 = vst [vmem:[#allocation13 + $0x48] sm:$0xff] (%p3151_p4), %v3851_v1  ;;  %v3204_v29 = vld [vmem:[#allocation4 + $0x180] sm:$0xff] (%p3151_p4) }
 0x36d   : > { %3141 = vst [vmem:[#allocation4 + $0x1b0] sm:$0xff] %v3077_v45  ;;  %v3181_v45 = vld [vmem:[#allocation4 + $0xc8] sm:$0xff] (%p3151_p4)  ;;  %v3206_v61 = vld [vmem:[#allocation4 + $0x190] sm:$0xff] (%p3151_p4)  ;;  %v3207_v48 = vld [vmem:[#allocation4 + $0x198] sm:$0xff] (%p3151_p4) }
 0x36e   : > { %3142 = vst [vmem:[#allocation4 + $0x1b8] sm:$0xff] %v3078_v14  ;;  %v3854_v14 = vpack.c.bf16 (%p3151_p4), %v3181_v45, %v3180_v39  ;;  %3422 = vst [vmem:[#allocation13 + $0x50] sm:$0xff] (%p3151_p4), %v3852_v24  ;;  %v3205_v37 = vld [vmem:[#allocation4 + $0x188] sm:$0xff] (%p3151_p4)  ;;  %v3867_v41 = vpack.c.bf16 (%p3151_p4), %v3207_v48, %v3206_v61 }
 0x36f   : > { %3423 = vst [vmem:[#allocation13 + $0x58] sm:$0xff] (%p3151_p4), %v3853_v57  ;;  %v3866_v18 = vpack.c.bf16 (%p3151_p4), %v3205_v37, %v3204_v29 }
 0x370   : > { %v3004_v20 = vpop.f32.mrb[88].mxu0  ;;  %3424 = vst [vmem:[#allocation13 + $0x60] sm:$0xff] (%p3151_p4), %v3854_v14  ;;  %3437 = vst [vmem:[#allocation13 + $0xc8] sm:$0xff] (%p3151_p4), %v3867_v41 }
 0x371   : > { %v3079_v49 = vadd.f32 %v3004_v20, %v2630_v23  ;;  %v3006_v46 = vpop.f32.mrb[89].mxu0  ;;  %v3183_v23 = vld [vmem:[#allocation4 + $0xd8] sm:$0xff] (%p3151_p4)  ;;  %v3185_v20 = vld [vmem:[#allocation4 + $0xe8] sm:$0xff] (%p3151_p4)  ;;  %3436 = vst [vmem:[#allocation13 + $0xc0] sm:$0xff] (%p3151_p4), %v3866_v18 }
 0x372   : > { %v3080_v40 = vadd.f32 %v3006_v46, %v2631_v26  ;;  %v3008_v16 = vpop.f32.mrb[90].mxu0  ;;  %v3184_v26 = vld [vmem:[#allocation4 + $0xe0] sm:$0xff] (%p3151_p4)  ;;  %v3186_v46 = vld [vmem:[#allocation4 + $0xf0] sm:$0xff] (%p3151_p4) }
 0x373   : > { %3143 = vst [vmem:[#allocation4 + $0x1c0] sm:$0xff] %v3079_v49  ;;  %v3081_v47 = vadd.f32 %v3008_v16, %v2632_v36  ;;  %v3010_v3 = vpop.f32.mrb[91].mxu0  ;;  %v3855_v36 = vpack.c.bf16 (%p3151_p4), %v3183_v23, %v3182_v2  ;;  %v3856_v49 = vpack.c.bf16 (%p3151_p4), %v3185_v20, %v3184_v26  ;;  %v3208_v52 = vld [vmem:[#allocation4 + $0x1a0] sm:$0xff] (%p3151_p4)  ;;  %v3209_v30 = vld [vmem:[#allocation4 + $0x1a8] sm:$0xff] (%p3151_p4) }
 0x374   : > { %3144 = vst [vmem:[#allocation4 + $0x1c8] sm:$0xff] %v3080_v40  ;;  %v3082_v53 = vadd.f32 %v3010_v3, %v2633_v62  ;;  %v3187_v62 = vld [vmem:[#allocation4 + $0xf8] sm:$0xff] (%p3151_p4)  ;;  %v3188_v40 = vld [vmem:[#allocation4 + $0x100] sm:$0xff] (%p3151_p4)  ;;  %v3190_v3 = vld [vmem:[#allocation4 + $0x110] sm:$0xff] (%p3151_p4)  ;;  %v3868_v59 = vpack.c.bf16 (%p3151_p4), %v3209_v30, %v3208_v52 }
 0x375   : > { %3145 = vst [vmem:[#allocation4 + $0x1d0] sm:$0xff] %v3081_v47  ;;  %v3857_v16 = vpack.c.bf16 (%p3151_p4), %v3187_v62, %v3186_v46  ;;  %v3189_v47 = vld [vmem:[#allocation4 + $0x108] sm:$0xff] (%p3151_p4)  ;;  %3425 = vst [vmem:[#allocation13 + $0x68] sm:$0xff] (%p3151_p4), %v3855_v36  ;;  %v3210_v42 = vld [vmem:[#allocation4 + $0x1b0] sm:$0xff] (%p3151_p4) }
 0x376   : > { %3146 = vst [vmem:[#allocation4 + $0x1d8] sm:$0xff] %v3082_v53  ;;  %v3191_v53 = vld [vmem:[#allocation4 + $0x118] sm:$0xff] (%p3151_p4)  ;;  %3426 = vst [vmem:[#allocation13 + $0x70] sm:$0xff] (%p3151_p4), %v3856_v49 }
 0x377   : > { %3427 = vst [vmem:[#allocation13 + $0x78] sm:$0xff] (%p3151_p4), %v3857_v16  ;;  %v3211_v15 = vld [vmem:[#allocation4 + $0x1b8] sm:$0xff] (%p3151_p4)  ;;  %3438 = vst [vmem:[#allocation13 + $0xd0] sm:$0xff] (%p3151_p4), %v3868_v59 }
 0x378   : > { %v3014_v31 = vpop.f32.mrb[92].mxu0  ;;  %3155 = sbr.rel (!%p3151_p4) target bundleno = 905 (0x389), region = 68  ;;  %v3869_v35 = vpack.c.bf16 (%p3151_p4), %v3211_v15, %v3210_v42 }
 0x379   : > { %v3083_v55 = vadd.f32 %v3014_v31, %v2634_v11  ;;  %v3016_v58 = vpop.f32.mrb[93].mxu0  ;;  %v3858_v11 = vpack.c.bf16 (%p3151_p4), %v3189_v47, %v3188_v40  ;;  %v3192_v31 = vld [vmem:[#allocation4 + $0x120] sm:$0xff] (%p3151_p4) }
 0x37a   : > { %v3084_v12 = vadd.f32 %v3016_v58, %v2635_v19  ;;  %v3018_v10 = vpop.f32.mrb[94].mxu0  ;;  %v3859_v19 = vpack.c.bf16 (%p3151_p4), %v3191_v53, %v3190_v3  ;;  %v3212_v0 = vld [vmem:[#allocation4 + $0x1c0] sm:$0xff] (%p3151_p4)  ;;  %3439 = vst [vmem:[#allocation13 + $0xd8] sm:$0xff] (%p3151_p4), %v3869_v35 }
 0x37b   : > { %3147 = vst [vmem:[#allocation4 + $0x1e0] sm:$0xff] %v3083_v55  ;;  %v3085_v51 = vadd.f32 %v3018_v10, %v2636_v4  ;;  %v3020_v44 = vpop.f32.mrb[95].mxu0  ;;  %v3193_v4 = vld [vmem:[#allocation4 + $0x128] sm:$0xff] (%p3151_p4)  ;;  %v3194_v55 = vld [vmem:[#allocation4 + $0x130] sm:$0xff] (%p3151_p4)  ;;  %3428 = vst [vmem:[#allocation13 + $0x80] sm:$0xff] (%p3151_p4), %v3858_v11 }
 0x37c   : > { %3148 = vst [vmem:[#allocation4 + $0x1e8] sm:$0xff] %v3084_v12  ;;  %v3086_v8 = vadd.f32 %v3020_v44, %v2637_v6  ;;  %v3860_v58 = vpack.c.bf16 (%p3151_p4), %v3193_v4, %v3192_v31  ;;  %v3195_v6 = vld [vmem:[#allocation4 + $0x138] sm:$0xff] (%p3151_p4)  ;;  %v3196_v12 = vld [vmem:[#allocation4 + $0x140] sm:$0xff] (%p3151_p4)  ;;  %v3197_v10 = vld [vmem:[#allocation4 + $0x148] sm:$0xff] (%p3151_p4) }
 0x37d   : > { %3149 = vst [vmem:[#allocation4 + $0x1f0] sm:$0xff] %v3085_v51  ;;  %3429 = vst [vmem:[#allocation13 + $0x88] sm:$0xff] (%p3151_p4), %v3859_v19  ;;  %v3861_v51 = vpack.c.bf16 (%p3151_p4), %v3195_v6, %v3194_v55  ;;  %v3862_v44 = vpack.c.bf16 (%p3151_p4), %v3197_v10, %v3196_v12  ;;  %v3213_v38 = vld [vmem:[#allocation4 + $0x1c8] sm:$0xff] (%p3151_p4)  ;;  %v3214_v25 = vld [vmem:[#allocation4 + $0x1d0] sm:$0xff] (%p3151_p4) }
 0x37e   : > { %3150 = vst [vmem:[#allocation4 + $0x1f8] sm:$0xff] %v3086_v8  ;;  %v3198_v8 = vld [vmem:[#allocation4 + $0x150] sm:$0xff] (%p3151_p4)  ;;  %3430 = vst [vmem:[#allocation13 + $0x90] sm:$0xff] (%p3151_p4), %v3860_v58  ;;  %v3215_v54 = vld [vmem:[#allocation4 + $0x1d8] sm:$0xff] (%p3151_p4)  ;;  %v3870_v21 = vpack.c.bf16 (%p3151_p4), %v3213_v38, %v3212_v0 }
 0x37f   : > { %v3863_v7 = vpack.c.bf16 %v3199_v34, %v3198_v8  ;;  %3431 = vst [vmem:[#allocation13 + $0x98] sm:$0xff] %v3861_v51  ;;  %3432 = vst [vmem:[#allocation13 + $0xa0] sm:$0xff] %v3862_v44  ;;  %v3871_v50 = vpack.c.bf16 %v3215_v54, %v3214_v25 }
 0x380   : > { %3440 = vst [vmem:[#allocation13 + $0xe0] sm:$0xff] %v3870_v21 }
 0x381   : > { %3433 = vst [vmem:[#allocation13 + $0xa8] sm:$0xff] %v3863_v7  ;;  %3441 = vst [vmem:[#allocation13 + $0xe8] sm:$0xff] %v3871_v50 }
 0x382   : > { %v3216_v60 = vld [vmem:[#allocation4 + $0x1e0] sm:$0xff] }
 0x383   : > { %v3217_v22 = vld [vmem:[#allocation4 + $0x1e8] sm:$0xff] }
 0x384   : > { %v3218_v17 = vld [vmem:[#allocation4 + $0x1f0] sm:$0xff]  ;;  %v3872_v43 = vpack.c.bf16 %v3217_v22, %v3216_v60 }
 0x385   : > { %v3219_v1 = vld [vmem:[#allocation4 + $0x1f8] sm:$0xff] }
 0x386   : > { %v3873_v13 = vpack.c.bf16 %v3219_v1, %v3218_v17  ;;  %3442 = vst [vmem:[#allocation13 + $0xf0] sm:$0xff] %v3872_v43 }
 0x388   : > { %3443 = vst [vmem:[#allocation13 + $0xf8] sm:$0xff] %v3873_v13 }
 0x389 PF: > { %p3937_p7 = scmp.eq.s32.totalorder %s4794_s30, 2  ;;  %s4659_s18 = smov [#allocation13]  }
 0x38a   : > { %s3454_s5 = sshll.u32 %s4659_s18, 4  ;;  %s3455_s5 = int_to_ptr.vmem [resolvable:$true] %s3454_s5 }
 0x38b   : > { %s4561_s23 = scalar_lea.vmem %s3455_s5, 4096  ;;  %p4568_p6 = scmp.lt.s32.totalorder %s3455_s5, %s3455_s5 }
 0x38c   : > { %p4562_p9 = scmp.ne.s32.totalorder %s3455_s5, %s4561_s23  ;;  %p4569_p13 = scmp.lt.s32.totalorder %s4561_s23, %s4561_s23 }
 0x38e   : > { %p4563_p12 = pnand %p4562_p9, %p3937_p7  ;;  %p4570_p3 = por %p4569_p13, %p4568_p6 }
 0x390   : > { %p4564_p10 = pneg %p4563_p12 }
 0x392   : > { %p4571_p2 = pnand %p4570_p3, %p4564_p10 }
 0x394   : > { %4574 = shalt.err (!%p4571_p2)
}
 0x395   : > { %s4575_s29 = scalar_lea.hbm %s5689_s4, 4096 }
 0x396   : > { %p4576_p8 = scmp.ne.s32.totalorder %s5689_s4, %s4575_s29  ;;  %p4581_p0 = scmp.lt.u32.totalorder %s4575_s29, %s5689_s4 }
 0x398   : > { %p4577_p5 = pnand %p4576_p8, %p3937_p7 }
 0x39a   : > { %p4578_p11 = pneg %p4577_p5 }
 0x39c   : > { %p4583_p1 = pnand %p4581_p0, %p4578_p11 }
 0x39e   : > { %4586 = shalt.err (!%p4583_p1)
}
 0x39f   : > { %s4660_s25 = smov 128   ;;  %s4661_s10 = smov 8  }
 0x3a0   : > { %3917 = dma.vmem_to_hbm [thread:$0]  (%p3937_p7), %s3455_s5, 4096, %s5689_s4, [#allocation7], %s4660_s25, %s4660_s25, %s4661_s10  }
 0x3a1   : > { %4624 = dma.done.wait (%p3937_p7), [#allocation7], 4096  }
 0x3a2   : > { %4626 = vsyncadd (%p3937_p7), [#allocation7], 4294963200 }
 0x3a3 PF: > { %s22_s20 = sadd.s32 1, %s4649_s20   ;;  %s5814_s15 = smov %s4633_s16 }
 0x3a4   : > { %p19_p4 = scmp.ge.s32.totalorder %s22_s20, 5   ;;  %s5815_s16 = smov %s4637_s17 }
 0x3a5   : > { %s5816_s17 = smov %s4734_s27  ;;  %s5817_s18 = smov %s4645_s19 }
 0x3a6   : > { %s5818_s19 = smov %s5820_s21  ;;  %21 = sbr.rel (!%p19_p4) target bundleno = 11 (0xb), region = 120 }
 0x3ad   :  { %3470 = vsyncpa [#allocation6], 1 }
 0x3ae   :  { %3472 = vsyncpa [#allocation6 + $0x1], 1 }
 0x3af   :  { %3473 = vsyncpa [#allocation9], 1 }
 0x3b0   :  { %3475 = vsyncpa [#allocation9 + $0x1], 1 }
 0x3b1   :  { %3476 = vsyncpa [#allocation12], 1 }
 0x3b2   :  { %3478 = vsyncpa [#allocation12 + $0x1], 1 }
 0x3b3   :  { %3479 = vsyncpa [#allocation7], 1 }
 0x3b4   :  { %3481 = vsyncpa [#allocation7 + $0x1], 1 }

</bundles_post_ra>
